<compile_context>
chip_gen: v7x
topology: tpu7x:2x2x1
jax: 0.10.0
libtpu: 0.0.40
codegen_flags: <defaults>
</compile_context>

<pallas_src>
import functools

import jax
import jax.numpy as jnp
import numpy as np
from jax.experimental import pallas as pl
from jax.experimental.pallas import tpu as pltpu

BN_EPS = 1e-5
LANE = 128


def _round_up(n, m):
    return ((n + m - 1) // m) * m


def _pad2(a, rows, cols):
    r, c = a.shape
    return jnp.pad(a, ((0, rows - r), (0, cols - c)))


# ----------------------------------------------------------------------------
# Kernel: one batch-row tile per grid step, all (folded) weights resident.
# ----------------------------------------------------------------------------
def _zinb_ae_kernel(
    x_ref,
    w1_ref, b1_ref,      # BN-folded layer1  [D , Hp]
    w2_ref, b2_ref,      # BN-folded layer2  [Hp, Lp]
    w3_ref, b3_ref,      # layer3            [Lp, Hp]
    wh_ref, bh_ref,      # fused heads       [Hp, 2*Dp]
    rate_ref, drop_ref, z_ref,
    *, dp,
):
    cdt = w1_ref.dtype                       # MXU input dtype (bf16)
    x = x_ref[...].astype(cdt)               # in-kernel cast (VPU slot has slack)

    # layer1: Linear(+folded BN) -> ReLU
    h1 = jnp.dot(x, w1_ref[...], preferred_element_type=jnp.float32) + b1_ref[...]
    h1 = jnp.maximum(h1, 0.0)

    # layer2: Linear(+folded BN) -> ReLU  => z
    z = jnp.dot(h1.astype(cdt), w2_ref[...],
                preferred_element_type=jnp.float32) + b2_ref[...]
    z = jnp.maximum(z, 0.0)
    z_ref[...] = z

    # layer3: Linear -> ReLU
    h3 = jnp.dot(z.astype(cdt), w3_ref[...],
                 preferred_element_type=jnp.float32) + b3_ref[...]
    h3 = jnp.maximum(h3, 0.0)

    # fused heads: one matmul, lane-aligned split (dp is a multiple of 128)
    s = jnp.dot(h3.astype(cdt), wh_ref[...],
                preferred_element_type=jnp.float32) + bh_ref[...]
    rate_ref[...] = jnp.exp(s[:, :dp])                         # layer_disp (exp)
    # sigmoid(u) == 0.5*(tanh(u/2)+1): keeps the transcendental on the EUP slot
    drop_ref[...] = 0.5 * (jnp.tanh(0.5 * s[:, dp:]) + 1.0)    # layer_drop


# ----------------------------------------------------------------------------
# Parameter preparation: fold eval-mode BN, pad output dims to 128, cast bf16.
# ----------------------------------------------------------------------------
def _fold_bn(w, b, g, be, rm, rv):
    scale = g * jax.lax.rsqrt(rv + BN_EPS)        # (1, out)
    return w * scale, (b - rm) * scale + be


def prepare_params(params, compute_dtype=jnp.bfloat16):
    D, H = params["w1"].shape
    L = params["w2"].shape[1]
    Dp, Hp, Lp = (_round_up(d, LANE) for d in (D, H, L))

    w1, b1 = _fold_bn(params["w1"], params["b1"], params["g1"], params["be1"],
                      params["rm1"], params["rv1"])
    w2, b2 = _fold_bn(params["w2"], params["b2"], params["g2"], params["be2"],
                      params["rm2"], params["rv2"])
    w3, b3 = params["w3"], params["b3"]

    # concatenate disp/drop heads -> single [H, 2*Dp] weight (lane-dense output)
    wh = jnp.concatenate([_pad2(params["wd"], H, Dp),
                          _pad2(params["wp"], H, Dp)], axis=1)
    bh = jnp.concatenate([_pad2(params["bd"], 1, Dp),
                          _pad2(params["bp"], 1, Dp)], axis=1)

    return dict(
        w1=_pad2(w1, D, Hp).astype(compute_dtype),   # contraction dim kept at D
        b1=_pad2(b1, 1, Hp).astype(jnp.float32),
        w2=_pad2(w2, Hp, Lp).astype(compute_dtype),
        b2=_pad2(b2, 1, Lp).astype(jnp.float32),
        w3=_pad2(w3, Lp, Hp).astype(compute_dtype),
        b3=_pad2(b3, 1, Hp).astype(jnp.float32),
        wh=_pad2(wh, Hp, 2 * Dp).astype(compute_dtype),
        bh=bh.astype(jnp.float32),
        dims=(D, H, L, Dp, Hp, Lp),
    )


# ----------------------------------------------------------------------------
# pallas_call builder + VMEM sizing
# ----------------------------------------------------------------------------
def _vmem_limit_bytes(tm, D, Dp, Hp, Lp, weight_bufs):
    w_bytes = 2 * (D * Hp + Hp * Lp + Lp * Hp + Hp * 2 * Dp)     # bf16 weights
    b_bytes = 4 * (2 * Hp + Lp + 2 * Dp)                          # f32 biases
    x_tiles = 2 * tm * D * 4                                      # dbl-buffered x
    out_tiles = 2 * (2 * tm * Dp * 4 + tm * Lp * 4)               # dbl-buffered outs
    interm = tm * (2 * Hp + Lp + 2 * Dp) * 4                      # live f32 temps
    est = weight_bufs * (w_bytes + b_bytes) + x_tiles + out_tiles + interm
    # headroom, but capped at 64 MiB so the same setting fits a v7x TC
    return int(min(64 << 20, max(int(est * 1.5) + (4 << 20), 16 << 20)))


def _build_call(tm, D, Dp, Hp, Lp, Np, single_buffer_weights):
    row = lambda i: (i, 0)       # tile over batch rows
    full = lambda i: (0, 0)      # parameters: whole array every step

    if single_buffer_weights and hasattr(pl, "Buffered"):
        wkw = dict(pipeline_mode=pl.Buffered(1))   # constant index_map -> 1 buffer
        wbufs = 1
    else:
        wkw = {}
        wbufs = 2

    def wspec(shape):
        return pl.BlockSpec(shape, full, **wkw)

    in_specs = [
        pl.BlockSpec((tm, D), row),                               # x (f32)
        wspec((D, Hp)), wspec((1, Hp)),                           # w1, b1
        wspec((Hp, Lp)), wspec((1, Lp)),                          # w2, b2
        wspec((Lp, Hp)), wspec((1, Hp)),                          # w3, b3
        wspec((Hp, 2 * Dp)), wspec((1, 2 * Dp)),                  # heads
    ]
    out_specs = [
        pl.BlockSpec((tm, Dp), row),   # rate_scaled
        pl.BlockSpec((tm, Dp), row),   # dropout (pi)
        pl.BlockSpec((tm, Lp), row),   # z
    ]
    out_shape = [
        jax.ShapeDtypeStruct((Np, Dp), jnp.float32),
        jax.ShapeDtypeStruct((Np, Dp), jnp.float32),
        jax.ShapeDtypeStruct((Np, Lp), jnp.float32),
    ]
    return pl.pallas_call(
        functools.partial(_zinb_ae_kernel, dp=Dp),
        out_shape=out_shape,
        grid_spec=pltpu.PrefetchScalarGridSpec(
            num_scalar_prefetch=0,
            grid=(Np // tm,),
            in_specs=in_specs,
            out_specs=out_specs,
        ),
        compiler_params=pltpu.CompilerParams(
            dimension_semantics=("parallel",),    # batch rows are independent
            vmem_limit_bytes=_vmem_limit_bytes(tm, D, Dp, Hp, Lp, wbufs),
        ),
    )


# ----------------------------------------------------------------------------
# Wrapper
# ----------------------------------------------------------------------------
def zinb_ae_forward(x, params, *, tm=256, compute_dtype=jnp.bfloat16):
    """Runs New_ZINB_AE.forward (eval mode).

    Returns (rate_scaled, theta, dropout, z) matching the PyTorch module.
    Note (v7x): pick tm so that N/tm >= 2 when possible to keep both
    TensorCores busy, and so the per-TC footprint stays under 64 MiB.
    """
    prep = prepare_params(params, compute_dtype)
    D, H, L, Dp, Hp, Lp = prep["dims"]

    N = x.shape[0]
    tm_eff = min(tm, _round_up(max(N, 1), 8))     # don't over-pad tiny batches
    Np = _round_up(max(N, 1), tm_eff)
    x_p = x.astype(jnp.float32)
    if Np != N:
        x_p = jnp.pad(x_p, ((0, Np - N), (0, 0)))  # row-only pad, no cast pass

    args = (x_p,
            prep["w1"], prep["b1"],
            prep["w2"], prep["b2"],
            prep["w3"], prep["b3"],
            prep["wh"], prep["bh"])

    try:
        call = _build_call(tm_eff, D, Dp, Hp, Lp, Np, single_buffer_weights=True)
        rate_p, drop_p, z_p = call(*args)
    except Exception:
        # Fallback: default double-buffered weights if Buffered(1) is rejected.
        call = _build_call(tm_eff, D, Dp, Hp, Lp, Np, single_buffer_weights=False)
        rate_p, drop_p, z_p = call(*args)

    theta = jnp.exp(params["logi"].reshape(-1))   # computed outside the kernel
    return rate_p[:N, :D], theta, drop_p[:N, :D], z_p[:N, :L]


# ----------------------------------------------------------------------------
# References
# ----------------------------------------------------------------------------
def _reference_f32(x, p):
    """Pure-JAX eval-mode reference of New_ZINB_AE.forward (full f32)."""
    def bn(h, g, be, rm, rv):
        return (h - rm) * jax.lax.rsqrt(rv + BN_EPS) * g + be

    h1 = jnp.maximum(bn(x @ p["w1"] + p["b1"], p["g1"], p["be1"], p["rm1"], p["rv1"]), 0.0)
    z = jnp.maximum(bn(h1 @ p["w2"] + p["b2"], p["g2"], p["be2"], p["rm2"], p["rv2"]), 0.0)
    h3 = jnp.maximum(z @ p["w3"] + p["b3"], 0.0)
    rate = jnp.exp(h3 @ p["wd"] + p["bd"])
    drop = jax.nn.sigmoid(h3 @ p["wp"] + p["bp"])
    theta = jnp.exp(p["logi"].reshape(-1))
    return rate, theta, drop, z


def _reference_prepared(x, prep):
    """Pure-JAX reference using the same folded/padded/bf16 params as the kernel."""
    D, H, L, Dp, Hp, Lp = prep["dims"]
    cd = prep["w1"].dtype
    xc = x.astype(cd)
    h1 = jnp.maximum(jnp.dot(xc, prep["w1"], preferred_element_type=jnp.float32) + prep["b1"], 0.0)
    z = jnp.maximum(jnp.dot(h1.astype(cd), prep["w2"], preferred_element_type=jnp.float32) + prep["b2"], 0.0)
    h3 = jnp.maximum(jnp.dot(z.astype(cd), prep["w3"], preferred_element_type=jnp.float32) + prep["b3"], 0.0)
    s = jnp.dot(h3.astype(cd), prep["wh"], preferred_element_type=jnp.float32) + prep["bh"]
    return jnp.exp(s[:, :Dp])[:, :D], jax.nn.sigmoid(s[:, Dp:])[:, :D], z[:, :L]


# ----------------------------------------------------------------------------
# Deterministic synthetic parameters (shapes from New_ZINB_AE.__init__)
# ----------------------------------------------------------------------------
def _init_params(key, input_dim, hidden_dim, latent_dim):
    ks = jax.random.split(key, 19)

    def lin(kw, kb, fan_in, fan_out):
        bound = 1.0 / np.sqrt(fan_in)
        w = jax.random.uniform(kw, (fan_in, fan_out), jnp.float32, -bound, bound)
        b = jax.random.uniform(kb, (1, fan_out), jnp.float32, -bound, bound)
        return w, b

    w1, b1 = lin(ks[0], ks[1], input_dim, hidden_dim)
    w2, b2 = lin(ks[2], ks[3], hidden_dim, latent_dim)
    w3, b3 = lin(ks[4], ks[5], latent_dim, hidden_dim)
    wd, bd = lin(ks[6], ks[7], hidden_dim, input_dim)
    wp, bp = lin(ks[8], ks[9], hidden_dim, input_dim)

    return dict(
        w1=w1, b1=b1, w2=w2, b2=b2, w3=w3, b3=b3,
        wd=wd, bd=bd, wp=wp, bp=bp,
        g1=1.0 + 0.1 * jax.random.normal(ks[10], (1, hidden_dim), jnp.float32),
        be1=0.1 * jax.random.normal(ks[11], (1, hidden_dim), jnp.float32),
        rm1=0.05 * jax.random.normal(ks[12], (1, hidden_dim), jnp.float32),
        rv1=1.0 + 0.1 * jax.random.uniform(ks[13], (1, hidden_dim), jnp.float32),
        g2=1.0 + 0.1 * jax.random.normal(ks[14], (1, latent_dim), jnp.float32),
        be2=0.1 * jax.random.normal(ks[15], (1, latent_dim), jnp.float32),
        rm2=0.05 * jax.random.normal(ks[16], (1, latent_dim), jnp.float32),
        rv2=1.0 + 0.1 * jax.random.uniform(ks[17], (1, latent_dim), jnp.float32),
        logi=jax.random.normal(ks[18], (input_dim,), jnp.float32),
    )


if __name__ == "__main__":
    input_dim, hidden_dim, latent_dim = 64, 32, 16
    batch = 200  # not a multiple of any tile -> exercises the padded last tile

    key = jax.random.PRNGKey(0)
    kx, kp = jax.random.split(key)
    x = jax.random.normal(kx, (batch, input_dim), jnp.float32)
    params = _init_params(kp, input_dim, hidden_dim, latent_dim)

    prep = prepare_params(params)
    r_rate, r_drop, r_z = _reference_prepared(x, prep)
    f_rate, f_theta, f_drop, f_z = _reference_f32(x, params)

    for tm in (128, 256):   # multi-tile grid and single (clamped) tile
        rate, theta, drop, z = jax.block_until_ready(
            zinb_ae_forward(x, params, tm=tm)
        )

        # 1) tight check vs a pure-JAX reference mirroring the kernel math
        #    (folded BN, padded head, bf16 MXU inputs, f32 accumulation)
        np.testing.assert_allclose(np.asarray(rate), np.asarray(r_rate), rtol=2e-3, atol=2e-3)
        np.testing.assert_allclose(np.asarray(drop), np.asarray(r_drop), rtol=2e-3, atol=2e-3)
        np.testing.assert_allclose(np.asarray(z), np.asarray(r_z), rtol=2e-3, atol=2e-3)

        # 2) loose check vs the full-f32 eval-mode module reference
        #    (difference is only the bf16 MXU-input cast)
        np.testing.assert_allclose(np.asarray(rate), np.asarray(f_rate), rtol=5e-2, atol=5e-2)
        np.testing.assert_allclose(np.asarray(drop), np.asarray(f_drop), rtol=5e-2, atol=5e-2)
        np.testing.assert_allclose(np.asarray(z), np.asarray(f_z), rtol=5e-2, atol=5e-2)
        np.testing.assert_allclose(np.asarray(theta), np.asarray(f_theta), rtol=1e-5, atol=1e-5)

        assert rate.shape == (batch, input_dim)
        assert theta.shape == (input_dim,)
        assert drop.shape == (batch, input_dim)
        assert z.shape == (batch, latent_dim)

    print("KERNEL_OK")
</pallas_src>

<mosaic_0001>
module attributes {stable_mosaic.version = 11 : i64} {
  func.func @_zinb_ae_kernel(%arg0: i32, %arg1: memref<128x64xf32, #tpu.memory_space<vmem>>, %arg2: memref<64x128xbf16, #tpu.memory_space<vmem>>, %arg3: memref<1x128xf32, #tpu.memory_space<vmem>>, %arg4: memref<128x128xbf16, #tpu.memory_space<vmem>>, %arg5: memref<1x128xf32, #tpu.memory_space<vmem>>, %arg6: memref<128x128xbf16, #tpu.memory_space<vmem>>, %arg7: memref<1x128xf32, #tpu.memory_space<vmem>>, %arg8: memref<128x256xbf16, #tpu.memory_space<vmem>>, %arg9: memref<1x256xf32, #tpu.memory_space<vmem>>, %arg10: memref<128x128xf32, #tpu.memory_space<vmem>>, %arg11: memref<128x128xf32, #tpu.memory_space<vmem>>, %arg12: memref<128x128xf32, #tpu.memory_space<vmem>>) attributes {dimension_semantics = [#tpu.dimension_semantics<parallel>], iteration_bounds = array<i64: 2>, scalar_prefetch = 0 : i64, scratch_operands = 0 : i64, tpu.core_type = #tpu.core_type<tc>, window_params = [{transform_indices = @transform_0, window_bounds = array<i64: 128, 64>}, {pipeline_mode = #tpu.pipeline_mode<synchronous>, transform_indices = @transform_1, window_bounds = array<i64: 64, 128>}, {pipeline_mode = #tpu.pipeline_mode<synchronous>, transform_indices = @transform_2, window_bounds = array<i64: 1, 128>}, {pipeline_mode = #tpu.pipeline_mode<synchronous>, transform_indices = @transform_3, window_bounds = array<i64: 128, 128>}, {pipeline_mode = #tpu.pipeline_mode<synchronous>, transform_indices = @transform_4, window_bounds = array<i64: 1, 128>}, {pipeline_mode = #tpu.pipeline_mode<synchronous>, transform_indices = @transform_5, window_bounds = array<i64: 128, 128>}, {pipeline_mode = #tpu.pipeline_mode<synchronous>, transform_indices = @transform_6, window_bounds = array<i64: 1, 128>}, {pipeline_mode = #tpu.pipeline_mode<synchronous>, transform_indices = @transform_7, window_bounds = array<i64: 128, 256>}, {pipeline_mode = #tpu.pipeline_mode<synchronous>, transform_indices = @transform_8, window_bounds = array<i64: 1, 256>}, {transform_indices = @transform_9, window_bounds = array<i64: 128, 128>}, {transform_indices = @transform_10, window_bounds = array<i64: 128, 128>}, {transform_indices = @transform_11, window_bounds = array<i64: 128, 128>}]} {
    %c0 = arith.constant 0 : index
    %c0_0 = arith.constant 0 : index
    %0 = vector.load %arg1[%c0, %c0_0] : memref<128x64xf32, #tpu.memory_space<vmem>>, vector<128x64xf32>
    %1 = arith.truncf %0 : vector<128x64xf32> to vector<128x64xbf16>
    %c0_1 = arith.constant 0 : index
    %c0_2 = arith.constant 0 : index
    %2 = vector.load %arg2[%c0_1, %c0_2] : memref<64x128xbf16, #tpu.memory_space<vmem>>, vector<64x128xbf16>
    %cst = arith.constant dense<0.000000e+00> : vector<128x128xf32>
    %3 = tpu.matmul %1, %2, %cst {dimension_numbers = #tpu.dot_dimension_numbers<[1], [0], [0], [1], [0, 0, 1, 1], [], []>} : vector<128x64xbf16>, vector<64x128xbf16>, vector<128x128xf32> -> vector<128x128xf32>
    %c0_3 = arith.constant 0 : index
    %c0_4 = arith.constant 0 : index
    %4 = vector.load %arg3[%c0_3, %c0_4] : memref<1x128xf32, #tpu.memory_space<vmem>>, vector<1x128xf32>
    %5 = vector.broadcast %4 : vector<1x128xf32> to vector<128x128xf32>
    %6 = arith.addf %3, %5 : vector<128x128xf32>
    %cst_5 = arith.constant 0.000000e+00 : f32
    %7 = vector.broadcast %cst_5 : f32 to vector<128x128xf32>
    %8 = arith.maximumf %6, %7 : vector<128x128xf32>
    %9 = arith.truncf %8 : vector<128x128xf32> to vector<128x128xbf16>
    %c0_6 = arith.constant 0 : index
    %c0_7 = arith.constant 0 : index
    %10 = vector.load %arg4[%c0_6, %c0_7] : memref<128x128xbf16, #tpu.memory_space<vmem>>, vector<128x128xbf16>
    %cst_8 = arith.constant dense<0.000000e+00> : vector<128x128xf32>
    %11 = tpu.matmul %9, %10, %cst_8 {dimension_numbers = #tpu.dot_dimension_numbers<[1], [0], [0], [1], [0, 0, 1, 1], [], []>} : vector<128x128xbf16>, vector<128x128xbf16>, vector<128x128xf32> -> vector<128x128xf32>
    %c0_9 = arith.constant 0 : index
    %c0_10 = arith.constant 0 : index
    %12 = vector.load %arg5[%c0_9, %c0_10] : memref<1x128xf32, #tpu.memory_space<vmem>>, vector<1x128xf32>
    %13 = vector.broadcast %12 : vector<1x128xf32> to vector<128x128xf32>
    %14 = arith.addf %11, %13 : vector<128x128xf32>
    %cst_11 = arith.constant 0.000000e+00 : f32
    %15 = vector.broadcast %cst_11 : f32 to vector<128x128xf32>
    %16 = arith.maximumf %14, %15 : vector<128x128xf32>
    %c0_12 = arith.constant 0 : index
    %c0_13 = arith.constant 0 : index
    %17 = vector.load %arg12[%c0_12, %c0_13] : memref<128x128xf32, #tpu.memory_space<vmem>>, vector<128x128xf32>
    tpu.vector_store %arg12[%c0_12, %c0_13], %16 {strides = array<i32>} : memref<128x128xf32, #tpu.memory_space<vmem>>, vector<128x128xf32>,
    %18 = arith.truncf %16 : vector<128x128xf32> to vector<128x128xbf16>
    %c0_14 = arith.constant 0 : index
    %c0_15 = arith.constant 0 : index
    %19 = vector.load %arg6[%c0_14, %c0_15] : memref<128x128xbf16, #tpu.memory_space<vmem>>, vector<128x128xbf16>
    %cst_16 = arith.constant dense<0.000000e+00> : vector<128x128xf32>
    %20 = tpu.matmul %18, %19, %cst_16 {dimension_numbers = #tpu.dot_dimension_numbers<[1], [0], [0], [1], [0, 0, 1, 1], [], []>} : vector<128x128xbf16>, vector<128x128xbf16>, vector<128x128xf32> -> vector<128x128xf32>
    %c0_17 = arith.constant 0 : index
    %c0_18 = arith.constant 0 : index
    %21 = vector.load %arg7[%c0_17, %c0_18] : memref<1x128xf32, #tpu.memory_space<vmem>>, vector<1x128xf32>
    %22 = vector.broadcast %21 : vector<1x128xf32> to vector<128x128xf32>
    %23 = arith.addf %20, %22 : vector<128x128xf32>
    %cst_19 = arith.constant 0.000000e+00 : f32
    %24 = vector.broadcast %cst_19 : f32 to vector<128x128xf32>
    %25 = arith.maximumf %23, %24 : vector<128x128xf32>
    %26 = arith.truncf %25 : vector<128x128xf32> to vector<128x128xbf16>
    %c0_20 = arith.constant 0 : index
    %c0_21 = arith.constant 0 : index
    %27 = vector.load %arg8[%c0_20, %c0_21] : memref<128x256xbf16, #tpu.memory_space<vmem>>, vector<128x256xbf16>
    %cst_22 = arith.constant dense<0.000000e+00> : vector<128x256xf32>
    %28 = tpu.matmul %26, %27, %cst_22 {dimension_numbers = #tpu.dot_dimension_numbers<[1], [0], [0], [1], [0, 0, 1, 1], [], []>} : vector<128x128xbf16>, vector<128x256xbf16>, vector<128x256xf32> -> vector<128x256xf32>
    %c0_23 = arith.constant 0 : index
    %c0_24 = arith.constant 0 : index
    %29 = vector.load %arg9[%c0_23, %c0_24] : memref<1x256xf32, #tpu.memory_space<vmem>>, vector<1x256xf32>
    %30 = vector.broadcast %29 : vector<1x256xf32> to vector<128x256xf32>
    %31 = arith.addf %28, %30 : vector<128x256xf32>
    %32 = vector.extract_strided_slice %31 {offsets = [0, 0], sizes = [128, 128], strides = [1, 1]} : vector<128x256xf32> to vector<128x128xf32>
    %33 = math.exp %32 : vector<128x128xf32>
    %c0_25 = arith.constant 0 : index
    %c0_26 = arith.constant 0 : index
    %34 = vector.load %arg10[%c0_25, %c0_26] : memref<128x128xf32, #tpu.memory_space<vmem>>, vector<128x128xf32>
    tpu.vector_store %arg10[%c0_25, %c0_26], %33 {strides = array<i32>} : memref<128x128xf32, #tpu.memory_space<vmem>>, vector<128x128xf32>,
    %35 = vector.extract_strided_slice %31 {offsets = [0, 128], sizes = [128, 128], strides = [1, 1]} : vector<128x256xf32> to vector<128x128xf32>
    %cst_27 = arith.constant 5.000000e-01 : f32
    %36 = vector.broadcast %cst_27 : f32 to vector<128x128xf32>
    %37 = arith.mulf %36, %35 : vector<128x128xf32>
    %38 = math.tanh %37 : vector<128x128xf32>
    %cst_28 = arith.constant 1.000000e+00 : f32
    %39 = vector.broadcast %cst_28 : f32 to vector<128x128xf32>
    %40 = arith.addf %38, %39 : vector<128x128xf32>
    %cst_29 = arith.constant 5.000000e-01 : f32
    %41 = vector.broadcast %cst_29 : f32 to vector<128x128xf32>
    %42 = arith.mulf %41, %40 : vector<128x128xf32>
    %c0_30 = arith.constant 0 : index
    %c0_31 = arith.constant 0 : index
    %43 = vector.load %arg11[%c0_30, %c0_31] : memref<128x128xf32, #tpu.memory_space<vmem>>, vector<128x128xf32>
    tpu.vector_store %arg11[%c0_30, %c0_31], %42 {strides = array<i32>} : memref<128x128xf32, #tpu.memory_space<vmem>>, vector<128x128xf32>,
    return
  }
  func.func @transform_0(%arg0: i32) -> (i32, i32) {
    %c0_i32 = arith.constant 0 : i32
    %c0_i32_0 = arith.constant 0 : i32
    return %arg0, %c0_i32 : i32, i32
  }
  func.func @transform_1(%arg0: i32) -> (i32, i32) {
    %c0_i32 = arith.constant 0 : i32
    %c0_i32_0 = arith.constant 0 : i32
    %c0_i32_1 = arith.constant 0 : i32
    return %c0_i32, %c0_i32_0 : i32, i32
  }
  func.func @transform_2(%arg0: i32) -> (i32, i32) {
    %c0_i32 = arith.constant 0 : i32
    %c0_i32_0 = arith.constant 0 : i32
    %c0_i32_1 = arith.constant 0 : i32
    return %c0_i32, %c0_i32_0 : i32, i32
  }
  func.func @transform_3(%arg0: i32) -> (i32, i32) {
    %c0_i32 = arith.constant 0 : i32
    %c0_i32_0 = arith.constant 0 : i32
    %c0_i32_1 = arith.constant 0 : i32
    return %c0_i32, %c0_i32_0 : i32, i32
  }
  func.func @transform_4(%arg0: i32) -> (i32, i32) {
    %c0_i32 = arith.constant 0 : i32
    %c0_i32_0 = arith.constant 0 : i32
    %c0_i32_1 = arith.constant 0 : i32
    return %c0_i32, %c0_i32_0 : i32, i32
  }
  func.func @transform_5(%arg0: i32) -> (i32, i32) {
    %c0_i32 = arith.constant 0 : i32
    %c0_i32_0 = arith.constant 0 : i32
    %c0_i32_1 = arith.constant 0 : i32
    return %c0_i32, %c0_i32_0 : i32, i32
  }
  func.func @transform_6(%arg0: i32) -> (i32, i32) {
    %c0_i32 = arith.constant 0 : i32
    %c0_i32_0 = arith.constant 0 : i32
    %c0_i32_1 = arith.constant 0 : i32
    return %c0_i32, %c0_i32_0 : i32, i32
  }
  func.func @transform_7(%arg0: i32) -> (i32, i32) {
    %c0_i32 = arith.constant 0 : i32
    %c0_i32_0 = arith.constant 0 : i32
    %c0_i32_1 = arith.constant 0 : i32
    return %c0_i32, %c0_i32_0 : i32, i32
  }
  func.func @transform_8(%arg0: i32) -> (i32, i32) {
    %c0_i32 = arith.constant 0 : i32
    %c0_i32_0 = arith.constant 0 : i32
    %c0_i32_1 = arith.constant 0 : i32
    return %c0_i32, %c0_i32_0 : i32, i32
  }
  func.func @transform_9(%arg0: i32) -> (i32, i32) {
    %c0_i32 = arith.constant 0 : i32
    %c0_i32_0 = arith.constant 0 : i32
    return %arg0, %c0_i32 : i32, i32
  }
  func.func @transform_10(%arg0: i32) -> (i32, i32) {
    %c0_i32 = arith.constant 0 : i32
    %c0_i32_0 = arith.constant 0 : i32
    return %arg0, %c0_i32 : i32, i32
  }
  func.func @transform_11(%arg0: i32) -> (i32, i32) {
    %c0_i32 = arith.constant 0 : i32
    %c0_i32_0 = arith.constant 0 : i32
    return %arg0, %c0_i32 : i32, i32
  }
}

module attributes {stable_mosaic.version = 11 : i64} {
  func.func @_zinb_ae_kernel(%arg0: i32, %arg1: memref<128x64xf32, #tpu.memory_space<vmem>>, %arg2: memref<64x128xbf16, #tpu.memory_space<vmem>>, %arg3: memref<1x128xf32, #tpu.memory_space<vmem>>, %arg4: memref<128x128xbf16, #tpu.memory_space<vmem>>, %arg5: memref<1x128xf32, #tpu.memory_space<vmem>>, %arg6: memref<128x128xbf16, #tpu.memory_space<vmem>>, %arg7: memref<1x128xf32, #tpu.memory_space<vmem>>, %arg8: memref<128x256xbf16, #tpu.memory_space<vmem>>, %arg9: memref<1x256xf32, #tpu.memory_space<vmem>>, %arg10: memref<128x128xf32, #tpu.memory_space<vmem>>, %arg11: memref<128x128xf32, #tpu.memory_space<vmem>>, %arg12: memref<128x128xf32, #tpu.memory_space<vmem>>) attributes {dimension_semantics = [#tpu.dimension_semantics<parallel>], iteration_bounds = array<i64: 2>, scalar_prefetch = 0 : i64, scratch_operands = 0 : i64, tpu.core_type = #tpu.core_type<tc>, window_params = [{transform_indices = @transform_0, window_bounds = array<i64: 128, 64>}, {pipeline_mode = #tpu.pipeline_mode<synchronous>, transform_indices = @transform_1, window_bounds = array<i64: 64, 128>}, {pipeline_mode = #tpu.pipeline_mode<synchronous>, transform_indices = @transform_2, window_bounds = array<i64: 1, 128>}, {pipeline_mode = #tpu.pipeline_mode<synchronous>, transform_indices = @transform_3, window_bounds = array<i64: 128, 128>}, {pipeline_mode = #tpu.pipeline_mode<synchronous>, transform_indices = @transform_4, window_bounds = array<i64: 1, 128>}, {pipeline_mode = #tpu.pipeline_mode<synchronous>, transform_indices = @transform_5, window_bounds = array<i64: 128, 128>}, {pipeline_mode = #tpu.pipeline_mode<synchronous>, transform_indices = @transform_6, window_bounds = array<i64: 1, 128>}, {pipeline_mode = #tpu.pipeline_mode<synchronous>, transform_indices = @transform_7, window_bounds = array<i64: 128, 256>}, {pipeline_mode = #tpu.pipeline_mode<synchronous>, transform_indices = @transform_8, window_bounds = array<i64: 1, 256>}, {transform_indices = @transform_9, window_bounds = array<i64: 128, 128>}, {transform_indices = @transform_10, window_bounds = array<i64: 128, 128>}, {transform_indices = @transform_11, window_bounds = array<i64: 128, 128>}]} {
    %c0 = arith.constant 0 : index
    %c0_0 = arith.constant 0 : index
    %0 = vector.load %arg1[%c0, %c0_0] : memref<128x64xf32, #tpu.memory_space<vmem>>, vector<128x64xf32>
    %1 = arith.truncf %0 : vector<128x64xf32> to vector<128x64xbf16>
    %c0_1 = arith.constant 0 : index
    %c0_2 = arith.constant 0 : index
    %2 = vector.load %arg2[%c0_1, %c0_2] : memref<64x128xbf16, #tpu.memory_space<vmem>>, vector<64x128xbf16>
    %cst = arith.constant dense<0.000000e+00> : vector<128x128xf32>
    %3 = tpu.matmul %1, %2, %cst {dimension_numbers = #tpu.dot_dimension_numbers<[1], [0], [0], [1], [0, 0, 1, 1], [], []>} : vector<128x64xbf16>, vector<64x128xbf16>, vector<128x128xf32> -> vector<128x128xf32>
    %c0_3 = arith.constant 0 : index
    %c0_4 = arith.constant 0 : index
    %4 = vector.load %arg3[%c0_3, %c0_4] : memref<1x128xf32, #tpu.memory_space<vmem>>, vector<1x128xf32>
    %5 = vector.broadcast %4 : vector<1x128xf32> to vector<128x128xf32>
    %6 = arith.addf %3, %5 : vector<128x128xf32>
    %cst_5 = arith.constant 0.000000e+00 : f32
    %7 = vector.broadcast %cst_5 : f32 to vector<128x128xf32>
    %8 = arith.maximumf %6, %7 : vector<128x128xf32>
    %9 = arith.truncf %8 : vector<128x128xf32> to vector<128x128xbf16>
    %c0_6 = arith.constant 0 : index
    %c0_7 = arith.constant 0 : index
    %10 = vector.load %arg4[%c0_6, %c0_7] : memref<128x128xbf16, #tpu.memory_space<vmem>>, vector<128x128xbf16>
    %cst_8 = arith.constant dense<0.000000e+00> : vector<128x128xf32>
    %11 = tpu.matmul %9, %10, %cst_8 {dimension_numbers = #tpu.dot_dimension_numbers<[1], [0], [0], [1], [0, 0, 1, 1], [], []>} : vector<128x128xbf16>, vector<128x128xbf16>, vector<128x128xf32> -> vector<128x128xf32>
    %c0_9 = arith.constant 0 : index
    %c0_10 = arith.constant 0 : index
    %12 = vector.load %arg5[%c0_9, %c0_10] : memref<1x128xf32, #tpu.memory_space<vmem>>, vector<1x128xf32>
    %13 = vector.broadcast %12 : vector<1x128xf32> to vector<128x128xf32>
    %14 = arith.addf %11, %13 : vector<128x128xf32>
    %cst_11 = arith.constant 0.000000e+00 : f32
    %15 = vector.broadcast %cst_11 : f32 to vector<128x128xf32>
    %16 = arith.maximumf %14, %15 : vector<128x128xf32>
    %c0_12 = arith.constant 0 : index
    %c0_13 = arith.constant 0 : index
    %17 = vector.load %arg12[%c0_12, %c0_13] : memref<128x128xf32, #tpu.memory_space<vmem>>, vector<128x128xf32>
    tpu.vector_store %arg12[%c0_12, %c0_13], %16 {strides = array<i32>} : memref<128x128xf32, #tpu.memory_space<vmem>>, vector<128x128xf32>,
    %18 = arith.truncf %16 : vector<128x128xf32> to vector<128x128xbf16>
    %c0_14 = arith.constant 0 : index
    %c0_15 = arith.constant 0 : index
    %19 = vector.load %arg6[%c0_14, %c0_15] : memref<128x128xbf16, #tpu.memory_space<vmem>>, vector<128x128xbf16>
    %cst_16 = arith.constant dense<0.000000e+00> : vector<128x128xf32>
    %20 = tpu.matmul %18, %19, %cst_16 {dimension_numbers = #tpu.dot_dimension_numbers<[1], [0], [0], [1], [0, 0, 1, 1], [], []>} : vector<128x128xbf16>, vector<128x128xbf16>, vector<128x128xf32> -> vector<128x128xf32>
    %c0_17 = arith.constant 0 : index
    %c0_18 = arith.constant 0 : index
    %21 = vector.load %arg7[%c0_17, %c0_18] : memref<1x128xf32, #tpu.memory_space<vmem>>, vector<1x128xf32>
    %22 = vector.broadcast %21 : vector<1x128xf32> to vector<128x128xf32>
    %23 = arith.addf %20, %22 : vector<128x128xf32>
    %cst_19 = arith.constant 0.000000e+00 : f32
    %24 = vector.broadcast %cst_19 : f32 to vector<128x128xf32>
    %25 = arith.maximumf %23, %24 : vector<128x128xf32>
    %26 = arith.truncf %25 : vector<128x128xf32> to vector<128x128xbf16>
    %c0_20 = arith.constant 0 : index
    %c0_21 = arith.constant 0 : index
    %27 = vector.load %arg8[%c0_20, %c0_21] : memref<128x256xbf16, #tpu.memory_space<vmem>>, vector<128x256xbf16>
    %cst_22 = arith.constant dense<0.000000e+00> : vector<128x256xf32>
    %28 = tpu.matmul %26, %27, %cst_22 {dimension_numbers = #tpu.dot_dimension_numbers<[1], [0], [0], [1], [0, 0, 1, 1], [], []>} : vector<128x128xbf16>, vector<128x256xbf16>, vector<128x256xf32> -> vector<128x256xf32>
    %c0_23 = arith.constant 0 : index
    %c0_24 = arith.constant 0 : index
    %29 = vector.load %arg9[%c0_23, %c0_24] : memref<1x256xf32, #tpu.memory_space<vmem>>, vector<1x256xf32>
    %30 = vector.broadcast %29 : vector<1x256xf32> to vector<128x256xf32>
    %31 = arith.addf %28, %30 : vector<128x256xf32>
    %32 = vector.extract_strided_slice %31 {offsets = [0, 0], sizes = [128, 128], strides = [1, 1]} : vector<128x256xf32> to vector<128x128xf32>
    %33 = math.exp %32 : vector<128x128xf32>
    %c0_25 = arith.constant 0 : index
    %c0_26 = arith.constant 0 : index
    %34 = vector.load %arg10[%c0_25, %c0_26] : memref<128x128xf32, #tpu.memory_space<vmem>>, vector<128x128xf32>
    tpu.vector_store %arg10[%c0_25, %c0_26], %33 {strides = array<i32>} : memref<128x128xf32, #tpu.memory_space<vmem>>, vector<128x128xf32>,
    %35 = vector.extract_strided_slice %31 {offsets = [0, 128], sizes = [128, 128], strides = [1, 1]} : vector<128x256xf32> to vector<128x128xf32>
    %cst_27 = arith.constant 5.000000e-01 : f32
    %36 = vector.broadcast %cst_27 : f32 to vector<128x128xf32>
    %37 = arith.mulf %36, %35 : vector<128x128xf32>
    %38 = math.tanh %37 : vector<128x128xf32>
    %cst_28 = arith.constant 1.000000e+00 : f32
    %39 = vector.broadcast %cst_28 : f32 to vector<128x128xf32>
    %40 = arith.addf %38, %39 : vector<128x128xf32>
    %cst_29 = arith.constant 5.000000e-01 : f32
    %41 = vector.broadcast %cst_29 : f32 to vector<128x128xf32>
    %42 = arith.mulf %41, %40 : vector<128x128xf32>
    %c0_30 = arith.constant 0 : index
    %c0_31 = arith.constant 0 : index
    %43 = vector.load %arg11[%c0_30, %c0_31] : memref<128x128xf32, #tpu.memory_space<vmem>>, vector<128x128xf32>
    tpu.vector_store %arg11[%c0_30, %c0_31], %42 {strides = array<i32>} : memref<128x128xf32, #tpu.memory_space<vmem>>, vector<128x128xf32>,
    return
  }
  func.func @transform_0(%arg0: i32) -> (i32, i32) {
    %c0_i32 = arith.constant 0 : i32
    %c0_i32_0 = arith.constant 0 : i32
    return %arg0, %c0_i32 : i32, i32
  }
  func.func @transform_1(%arg0: i32) -> (i32, i32) {
    %c0_i32 = arith.constant 0 : i32
    %c0_i32_0 = arith.constant 0 : i32
    %c0_i32_1 = arith.constant 0 : i32
    return %c0_i32, %c0_i32_0 : i32, i32
  }
  func.func @transform_2(%arg0: i32) -> (i32, i32) {
    %c0_i32 = arith.constant 0 : i32
    %c0_i32_0 = arith.constant 0 : i32
    %c0_i32_1 = arith.constant 0 : i32
    return %c0_i32, %c0_i32_0 : i32, i32
  }
  func.func @transform_3(%arg0: i32) -> (i32, i32) {
    %c0_i32 = arith.constant 0 : i32
    %c0_i32_0 = arith.constant 0 : i32
    %c0_i32_1 = arith.constant 0 : i32
    return %c0_i32, %c0_i32_0 : i32, i32
  }
  func.func @transform_4(%arg0: i32) -> (i32, i32) {
    %c0_i32 = arith.constant 0 : i32
    %c0_i32_0 = arith.constant 0 : i32
    %c0_i32_1 = arith.constant 0 : i32
    return %c0_i32, %c0_i32_0 : i32, i32
  }
  func.func @transform_5(%arg0: i32) -> (i32, i32) {
    %c0_i32 = arith.constant 0 : i32
    %c0_i32_0 = arith.constant 0 : i32
    %c0_i32_1 = arith.constant 0 : i32
    return %c0_i32, %c0_i32_0 : i32, i32
  }
  func.func @transform_6(%arg0: i32) -> (i32, i32) {
    %c0_i32 = arith.constant 0 : i32
    %c0_i32_0 = arith.constant 0 : i32
    %c0_i32_1 = arith.constant 0 : i32
    return %c0_i32, %c0_i32_0 : i32, i32
  }
  func.func @transform_7(%arg0: i32) -> (i32, i32) {
    %c0_i32 = arith.constant 0 : i32
    %c0_i32_0 = arith.constant 0 : i32
    %c0_i32_1 = arith.constant 0 : i32
    return %c0_i32, %c0_i32_0 : i32, i32
  }
  func.func @transform_8(%arg0: i32) -> (i32, i32) {
    %c0_i32 = arith.constant 0 : i32
    %c0_i32_0 = arith.constant 0 : i32
    %c0_i32_1 = arith.constant 0 : i32
    return %c0_i32, %c0_i32_0 : i32, i32
  }
  func.func @transform_9(%arg0: i32) -> (i32, i32) {
    %c0_i32 = arith.constant 0 : i32
    %c0_i32_0 = arith.constant 0 : i32
    return %arg0, %c0_i32 : i32, i32
  }
  func.func @transform_10(%arg0: i32) -> (i32, i32) {
    %c0_i32 = arith.constant 0 : i32
    %c0_i32_0 = arith.constant 0 : i32
    return %arg0, %c0_i32 : i32, i32
  }
  func.func @transform_11(%arg0: i32) -> (i32, i32) {
    %c0_i32 = arith.constant 0 : i32
    %c0_i32_0 = arith.constant 0 : i32
    return %arg0, %c0_i32 : i32, i32
  }
}

</mosaic_0001>

<bundles_post_ra>
// kernel: tpu_custom_call.1
= control target key start
LH: loop header
LB: loop body
LE: loop exit
PB: predicated region body
PF: predicated region fallthrough
CT: control target
= control target key end

     0   :  { %s2607_s0 = inlined_call_operand.vmem [shape: f32[256,64], index: 0, kind: input, shape index: {}]   ;;  %s2608_s1 = inlined_call_operand.vmem [shape: bf16[64,128], index: 1, kind: input, shape index: {}]   ;;  %s2609_s2 = inlined_call_operand.vmem [shape: f32[1,128], index: 2, kind: input, shape index: {}]   ;;  %s2610_s3 = inlined_call_operand.vmem [shape: bf16[128,128], index: 3, kind: input, shape index: {}]   ;;  %s2611_s4 = inlined_call_operand.vmem [shape: f32[1,128], index: 4, kind: input, shape index: {}]   ;;  %s2612_s5 = inlined_call_operand.vmem [shape: bf16[128,128], index: 5, kind: input, shape index: {}]   ;;  %s2613_s6 = inlined_call_operand.vmem [shape: f32[1,128], index: 6, kind: input, shape index: {}]   ;;  %s2614_s7 = inlined_call_operand.vmem [shape: bf16[128,256], index: 7, kind: input, shape index: {}]   ;;  %s2615_s8 = inlined_call_operand.vmem [shape: f32[1,256], index: 8, kind: input, shape index: {}]   ;;  %s2616_s9 = inlined_call_operand.hbm [shape: f32[256,128], index: 9, kind: output, shape index: {0}]   ;;  %s2617_s10 = inlined_call_operand.hbm [shape: f32[256,128], index: 10, kind: output, shape index: {1}]   ;;  %s2618_s11 = inlined_call_operand.hbm [shape: f32[256,128], index: 11, kind: output, shape index: {2}]  }
   0x1   :  { %2621 = sst [smem:[#allocation10_spill]] %s2607_s0 }
   0x2   :  { %2622 = sst [smem:[#allocation11_spill]] %s2608_s1 }
   0x3   :  { %2623 = sst [smem:[#allocation12_spill]] %s2609_s2 }
   0x4   :  { %2624 = sst [smem:[#allocation13_spill]] %s2610_s3 }
   0x5   :  { %2625 = sst [smem:[#allocation14_spill]] %s2611_s4 }
   0x6   :  { %17 = vsyncpa [#allocation3], 0 }
   0x7   :  { %19 = vsyncpa [#allocation3 + $0x1], 0 }
   0x8   :  { %20 = vsyncpa [#allocation5], 0 }
   0x9   :  { %22 = vsyncpa [#allocation5 + $0x1], 0  ;;  %s2114_s17 = smov 0   ;;  %s2116_s18 = smov 0  }
   0xa   :  { %s2118_s19 = smov 0   ;;  %s2120_s20 = smov 0  }
   0xb LB: > { %s2135_s21 = sadd.s32 4294967295, %s2046_s20   ;;  %s2619_s22 = sadd.s32 4294967294, %s2046_s20   ;;  %s2046_s20 = sphi %s2120_s20, %s2642_s20   ;;  %s2042_s19 = sphi %s2118_s19, %s2641_s19   ;;  %s2038_s18 = sphi %s2116_s18, %s2640_s18   ;;  %s2034_s17 = sphi %s2114_s17, %s2639_s17  }
   0xc   : > { %s2139_s23 = sadd.s32 1, %s2046_s20   ;;  %s229_s24 = sadd.s32 1, %s2042_s19 }
   0xd   : > { %s226_s25 = ssub.s32 %s2046_s20, %s2139_s23  ;;  %p239_p0 = scmp.ne.s32.totalorder %s2042_s19, %s2038_s18 }
   0xe   : > { %p227_p1 = scmp.eq.s32.totalorder %s226_s25, 0  ;;  %p240_p2 = scmp.eq.s32.totalorder %s2135_s21, 1 }
   0xf   : > { %p245_p3 = scmp.ne.s32.totalorder %s2038_s18, %s2034_s17  ;;  %p246_p4 = scmp.eq.s32.totalorder %s2619_s22, 1 }
  0x10   : > { %s2152_s26 = scalar_select %p227_p1, %s2042_s19, %s229_s24  }
  0x11   : > { %p2154_p5 = por %p240_p2, %p239_p0  ;;  %p2158_p6 = por %p246_p4, %p245_p3 }
  0x12   : > { %2626 = sst [smem:[#allocation9_spill]] %s2152_s26  ;;  %p1549_p7 = scmp.ge.s32.totalorder %s2046_s20, 1 }
  0x13   : > { %p349_p8 = scmp.lt.s32.totalorder %s2046_s20, 3 }
  0x15   : > { %p350_p9 = pnand %p1549_p7, %p349_p8 }
  0x16   : > { %s2629_s1 = sld [smem:[#allocation11_spill]] (!%p350_p9)  ;;  %s1553_s12 = sshll.u32 (!%p350_p9), %s2135_s21, 4  ;;  %vm472_vm0 = vcmask (!%p350_p9), 523264   ;;  %v1828_v36 = vld [vmem:[%s2612_s5] sm:$0xff] (!%p350_p9)   ;;  %v1829_v37 = vld [vmem:[%s2612_s5 + $0x8] sm:$0xff] (!%p350_p9)   ;;  %v1830_v38 = vld [vmem:[%s2612_s5 + $0x10] sm:$0xff] (!%p350_p9)  }
  0x17   : > { %353 = sbr.rel (%p350_p9) target bundleno = 1042 (0x412), region = 56  ;;  %p400_p10 = scmp.lt.s32.totalorder (!%p350_p9), %s1553_s12, 31  ;;  %v1831_v39 = vld [vmem:[%s2612_s5 + $0x18] sm:$0xff] (!%p350_p9)   ;;  %v1832_v40 = vld [vmem:[%s2612_s5 + $0x20] sm:$0xff] (!%p350_p9)   ;;  %v1833_v41 = vld [vmem:[%s2612_s5 + $0x28] sm:$0xff] (!%p350_p9)  }
  0x18   : > { %s2630_s3 = sld [smem:[#allocation13_spill]] (!%p350_p9)  ;;  %s2631_s0 = sld [smem:[#allocation10_spill]] (!%p350_p9) }
  0x19   : > { %s2632_s2 = sld [smem:[#allocation12_spill]] (!%p350_p9)  ;;  %s2620_s15 = sand.u32 (!%p350_p9), 1, %s2038_s18  }
  0x1a   : > { %s2633_s4 = sld [smem:[#allocation14_spill]] (!%p350_p9)  ;;  %s2325_s25 = sshll.u32 (!%p350_p9), %s2620_s15, 7 }
  0x1b   : > { %s2413_s22 = scalar_lea.vmem (!%p350_p9), [#allocation2], %s2325_s25 }
  0x1c   : > { %v1816_v0 = vld [vmem:[%s2629_s1] sm:$0xff] (!%p350_p9)   ;;  %v1817_v1 = vld [vmem:[%s2629_s1 + $0x8] sm:$0xff] (!%p350_p9)   ;;  %v1818_v2 = vld [vmem:[%s2629_s1 + $0x10] sm:$0xff] (!%p350_p9)   ;;  %s1391_s16 = sshll.u32 (!%p350_p9), %s2413_s22, 4  ;;  %s2477_s16 = int_to_ptr.vmem [resolvable:$true] %s1391_s16 }
  0x1d   : > { %1660 = vmatprep.subr.bf16.mxu0 (!%p350_p9), %v1816_v0  ;;  %v1819_v7 = vld [vmem:[%s2629_s1 + $0x18] sm:$0xff] (!%p350_p9)   ;;  %s1924_s24 = scalar_lea.vmem (!%p350_p9), %s2477_s16, 2048 }
  0x1e   : > { %1661 = vmatpush3.bf16.msra.mxu0 %v1816_v0  ;;  %s2644_s12 = smov (!%p400_p10, %s1553_s12), 31  ;;  %v1820_v3 = vld [vmem:[%s2630_s3] sm:$0xff]   ;;  %v1821_v4 = vld [vmem:[%s2630_s3 + $0x8] sm:$0xff]   ;;  %v1822_v9 = vld [vmem:[%s2630_s3 + $0x10] sm:$0xff]   ;;  %p1925_p11 = scmp.ne.s32.totalorder %s2477_s16, %s1924_s24 }
  0x1f   : > { %1662 = vmatprep.subr.bf16.mxu0 %v1817_v1  ;;  %s1554_s29 = sshll.u32 %s2644_s12, 3  ;;  %1684 = vmatprep.subr.bf16.mxu1 %v1820_v3  ;;  %v1823_v14 = vld [vmem:[%s2630_s3 + $0x18] sm:$0xff]   ;;  %v1824_v17 = vld [vmem:[%s2630_s3 + $0x20] sm:$0xff]   ;;  %v1825_v22 = vld [vmem:[%s2630_s3 + $0x28] sm:$0xff]   ;;  %s2423_s12 = scalar_lea.vmem [#allocation4], %s2325_s25 }
  0x20   : > { %s2183_s26 = scalar_lea.vmem %s2631_s0, %s1554_s29  ;;  %1685 = vmatpush3.bf16.msra.mxu1 %v1820_v3  ;;  %v1826_v34 = vld [vmem:[%s2630_s3 + $0x30] sm:$0xff]   ;;  %v1827_v35 = vld [vmem:[%s2630_s3 + $0x38] sm:$0xff]   ;;  %v1555_v42 = vld [vmem:[%s2632_s2] ss:$0 sm:$0xff]  ;;  %s1407_s14 = sshll.u32 %s2423_s12, 4  ;;  %s2521_s14 = int_to_ptr.vmem [resolvable:$true] %s1407_s14 }
  0x21   : > { %v409_v5 = vld [vmem:[%s2183_s26] sm:$0xff]  ;;  %v410_v6 = vld [vmem:[%s2183_s26 + $0x8] sm:$0xff]  ;;  %1686 = vmatprep.subr.bf16.mxu1 %v1821_v4  ;;  %v411_v10 = vld [vmem:[%s2183_s26 + $0x10] sm:$0xff]  ;;  %s2634_s0 = sand.u32 1, %s2038_s18   ;;  %p1926_p12 = pnand %p1925_p11, %p2154_p5 }
  0x22   : > { %1663 = vmatpush3.bf16.msra.mxu0 %v1817_v1  ;;  %v425_v8 = vpack.c.bf16 %v410_v6, %v409_v5  ;;  %v412_v11 = vld [vmem:[%s2183_s26 + $0x18] sm:$0xff]  ;;  %v413_v12 = vld [vmem:[%s2183_s26 + $0x20] sm:$0xff]  ;;  %v414_v13 = vld [vmem:[%s2183_s26 + $0x28] sm:$0xff]  ;;  %s2485_s1 = scalar_lea.sflag [#allocation3], %s2634_s0  ;;  %s2049_s29 = smov [#allocation2]  }
  0x23   : > { %1664 = vmatprep.subr.bf16.mxu0 %v1818_v2  ;;  %v426_v15 = vpack.c.bf16 %v412_v11, %v411_v10  ;;  %v427_v16 = vpack.c.bf16 %v414_v13, %v413_v12  ;;  %v415_v18 = vld [vmem:[%s2183_s26 + $0x30] sm:$0xff]  ;;  %v416_v19 = vld [vmem:[%s2183_s26 + $0x38] sm:$0xff]  ;;  %v417_v20 = vld [vmem:[%s2183_s26 + $0x40] sm:$0xff]  ;;  %p1927_p13 = pneg %p1926_p12  ;;  %s1928_s2 = sshll.u32 %s2049_s29, 4  ;;  %s1929_s2 = int_to_ptr.vmem [resolvable:$false] %s1928_s2 }
  0x24   : > { %1668 = vmatprep.mubr.msk.bf16.mxu0 %vm472_vm0, %v425_v8  ;;  %1687 = vmatpush3.bf16.msra.mxu1 %v1821_v4  ;;  %v418_v21 = vld [vmem:[%s2183_s26 + $0x48] sm:$0xff]  ;;  %v428_v23 = vpack.c.bf16 %v416_v19, %v415_v18  ;;  %v419_v25 = vld [vmem:[%s2183_s26 + $0x50] sm:$0xff]  ;;  %v420_v26 = vld [vmem:[%s2183_s26 + $0x58] sm:$0xff]  ;;  %s1930_s3 = scalar_lea.vmem %s1929_s2, 4096  ;;  %p1931_p0 = scmp.lt.s32.totalorder %s2477_s16, %s1929_s2 }
  0x25   : > { %1688 = vmatprep.subr.bf16.mxu1 %v1822_v9  ;;  %v429_v24 = vpack.c.bf16 %v418_v21, %v417_v20  ;;  %v421_v27 = vld [vmem:[%s2183_s26 + $0x60] sm:$0xff]  ;;  %v422_v28 = vld [vmem:[%s2183_s26 + $0x68] sm:$0xff]  ;;  %v430_v29 = vpack.c.bf16 %v420_v26, %v419_v25  ;;  %v423_v31 = vld [vmem:[%s2183_s26 + $0x70] sm:$0xff]  ;;  %p1932_p1 = scmp.lt.s32.totalorder %s1930_s3, %s1924_s24 }
  0x26   : > { %1665 = vmatpush3.bf16.msra.mxu0 %v1818_v2  ;;  %v431_v30 = vpack.c.bf16 %v422_v28, %v421_v27  ;;  %v424_v32 = vld [vmem:[%s2183_s26 + $0x78] sm:$0xff]  ;;  %s2332_s26 = scalar_lea.vmem [#allocation6], %s2325_s25  ;;  %s2466_s25 = sshll.u32 %s2135_s21, 11 }
  0x27   : > { %1666 = vmatprep.subr.bf16.mxu0 %v1819_v7  ;;  %v432_v33 = vpack.c.bf16 %v424_v32, %v423_v31  ;;  %s2475_s30 = scalar_lea.hbm %s2616_s9, %s2466_s25  ;;  %p1933_p2 = por %p1932_p1, %p1931_p0 }
  0x28   : > { %1689 = vmatpush3.bf16.msra.mxu1 %v1822_v9 }
  0x29   : > { %1690 = vmatprep.subr.bf16.mxu1 %v1823_v14  ;;  %p1934_p3 = pnand %p1933_p2, %p1927_p13 }
  0x2a   : > { %1667 = vmatpush3.bf16.msra.mxu0 %v1819_v7 }
  0x2b   : > { %1716 = vmatprep.subr.bf16.mxu0 %v1828_v36 }
  0x2c   : > { %1691 = vmatpush3.bf16.msra.mxu1 %v1823_v14 }
  0x2d   : > { %1669 = vmatmul.mubr.msk.bf16.vlgmr.msra.gmra.mrb[0].mxu0 %vm472_vm0, %v426_v15  ;;  %1692 = vmatprep.subr.bf16.mxu1 %v1824_v17 }
  0x2e   : > { %1672 = vmatprep.mubr.msk.bf16.mxu0 %vm472_vm0, %v427_v16  ;;  %1717 = vmatpush3.bf16.msra.mxu0 %v1828_v36  ;;  %v1835_v36 = vld [vmem:[%s2612_s5 + $0x38] sm:$0xff]  }
  0x2f   : > { %1718 = vmatprep.subr.bf16.mxu0 %v1829_v37 }
  0x30   : > { %1693 = vmatpush3.bf16.msra.mxu1 %v1824_v17 }
  0x31   : > { %1694 = vmatprep.subr.bf16.mxu1 %v1825_v22 }
  0x32   : > { %1719 = vmatpush3.bf16.msra.mxu0 %v1829_v37  ;;  %v1838_v37 = vld [vmem:[%s2614_s7 + $0x4] ss:$8 sps:$4 sm:$0xff]  }
  0x33   : > { %1720 = vmatprep.subr.bf16.mxu0 %v1830_v38 }
  0x34   : > { %1695 = vmatpush3.bf16.msra.mxu1 %v1825_v22 }
  0x35   : > { %1673 = vmatmul.mubr.msk.bf16.gmra.mrb[4].mxu0 %vm472_vm0, %v428_v23  ;;  %1696 = vmatprep.subr.bf16.mxu1 %v1826_v34 }
  0x36   : > { %1676 = vmatprep.mubr.msk.bf16.mxu0 %vm472_vm0, %v429_v24  ;;  %1721 = vmatpush3.bf16.msra.mxu0 %v1830_v38  ;;  %v1836_v38 = vld [vmem:[%s2614_s7] ss:$8 sps:$4 sm:$0xff]  }
  0x37   : > { %1722 = vmatprep.subr.bf16.mxu0 %v1831_v39 }
  0x38   : > { %1697 = vmatpush3.bf16.msra.mxu1 %v1826_v34 }
  0x39   : > { %1698 = vmatprep.subr.bf16.mxu1 %v1827_v35 }
  0x3a   : > { %1723 = vmatpush3.bf16.msra.mxu0 %v1831_v39  ;;  %v1841_v39 = vld [vmem:[%s2614_s7 + $0x14] ss:$8 sps:$4 sm:$0xff]  }
  0x3b   : > { %1724 = vmatprep.subr.bf16.mxu0 %v1832_v40 }
  0x3c   : > { %1699 = vmatpush3.bf16.msra.mxu1 %v1827_v35  ;;  %v1834_v35 = vld [vmem:[%s2612_s5 + $0x30] sm:$0xff]  }
  0x3d   : > { %1677 = vmatmul.mubr.msk.bf16.gmra.mrb[8].mxu0 %vm472_vm0, %v430_v29  ;;  %1748 = vmatprep.subr.bf16.mxu1 %v1838_v37 }
  0x3e   : > { %1680 = vmatprep.mubr.msk.bf16.mxu0 %vm472_vm0, %v431_v30  ;;  %1725 = vmatpush3.bf16.msra.mxu0 %v1832_v40  ;;  %v1839_v40 = vld [vmem:[%s2614_s7 + $0x10] ss:$8 sps:$4 sm:$0xff]  }
  0x3f   : > { %1726 = vmatprep.subr.bf16.mxu0 %v1833_v41 }
  0x42   : > { %1727 = vmatpush3.bf16.msra.mxu0 %v1833_v41  ;;  %v2272_v41 = vld [vmem:[%s2614_s7 + $0x24] ss:$8 sps:$4 sm:$0xff]  }
  0x43   : > { %1728 = vmatprep.subr.bf16.mxu0 %v1834_v35 }
  0x45   : > { %1681 = vmatmul.mubr.msk.bf16.gmra.mrb[12].mxu0 %vm472_vm0, %v432_v33 }
  0x46   : > { %1729 = vmatpush3.bf16.msra.mxu0 %v1834_v35 }
  0x47   : > { %1730 = vmatprep.subr.bf16.mxu0 %v1835_v36 }
  0x4a   : > { %1731 = vmatpush3.bf16.msra.mxu0 %v1835_v36 }
  0x4b   : > { %1126 = vmatprep.subr.bf16.mxu0 %v1838_v37 }
 0x100   : > { %v1670_v43 = vpop.f32.mrb[0].mxu0 }
 0x101   : > { %v540_v44 = vadd.f32 %v1670_v43, %v1555_v42  ;;  %v531_v45 = vpop.f32.mrb[1].mxu0  ;;  %v2283_v43 = vld [vmem:[%s2614_s7 + $0x34] ss:$8 sps:$4 sm:$0xff]  }
 0x102   : > { %v532_v46 = vadd.f32 %v1555_v42, %v531_v45  ;;  %v1671_v47 = vpop.f32.mrb[2].mxu0  ;;  %v2295_v45 = vld [vmem:[%s2614_s7 + $0x44] ss:$8 sps:$4 sm:$0xff]  }
 0x103   : > { %v543_v48 = vadd.f32 %v1671_v47, %v1555_v42  ;;  %v534_v49 = vpop.f32.mrb[3].mxu0  ;;  %v596_v51 = vmax.f32 %v540_v44, 0.0  ;;  %v2290_v44 = vld [vmem:[%s2614_s7 + $0x30] ss:$8 sps:$4 sm:$0xff]   ;;  %v2307_v47 = vld [vmem:[%s2614_s7 + $0x54] ss:$8 sps:$4 sm:$0xff]  }
 0x104   : > { %v535_v50 = vadd.f32 %v1555_v42, %v534_v49  ;;  %v594_v53 = vmax.f32 %v532_v46, 0.0  ;;  %v2302_v46 = vld [vmem:[%s2614_s7 + $0x40] ss:$8 sps:$4 sm:$0xff]  }
 0x105   : > { %v597_v52 = vmax.f32 %v543_v48, 0.0  ;;  %v2314_v48 = vld [vmem:[%s2614_s7 + $0x50] ss:$8 sps:$4 sm:$0xff]   ;;  %v2321_v49 = vld [vmem:[%s2633_s4] ss:$0 sm:$0xff] }
 0x106   : > { %v595_v54 = vmax.f32 %v535_v50, 0.0 }
 0x107   : > { %v611_v55 = vpack.c.bf16 %v597_v52, %v596_v51 }
 0x108   : > { %v1674_v56 = vpop.f32.mrb[4].mxu0  ;;  %v610_v57 = vpack.c.bf16 %v595_v54, %v594_v53 }
 0x109   : > { %v556_v58 = vadd.f32 %v1674_v56, %v1555_v42  ;;  %v547_v59 = vpop.f32.mrb[5].mxu0 }
 0x10a   : > { %v548_v60 = vadd.f32 %v1555_v42, %v547_v59  ;;  %v1675_v61 = vpop.f32.mrb[6].mxu0  ;;  %1700 = vmatprep.mubr.bf16.mxu1 %v610_v57 }
 0x10b   : > { %v559_v62 = vadd.f32 %v1675_v61, %v1555_v42  ;;  %v550_v63 = vpop.f32.mrb[7].mxu0  ;;  %1701 = vmatmul.mubr.bf16.vlgmr.msra.gmra.mrb[0].mxu1 %v611_v55  ;;  %v600_v1 = vmax.f32 %v556_v58, 0.0 }
 0x10c   : > { %v551_v0 = vadd.f32 %v1555_v42, %v550_v63  ;;  %v598_v3 = vmax.f32 %v548_v60, 0.0  ;;  %1756 = vmatpush1.bf16.msra.mxu1 %v1836_v38 }
 0x10d   : > { %v601_v2 = vmax.f32 %v559_v62, 0.0  ;;  %1749 = vmatprep.subr.bf16.mxu1 %v1841_v39 }
 0x10e   : > { %v599_v4 = vmax.f32 %v551_v0, 0.0 }
 0x10f   : > { %v613_v5 = vpack.c.bf16 %v601_v2, %v600_v1 }
 0x110   : > { %v612_v6 = vpack.c.bf16 %v599_v4, %v598_v3  ;;  %v1678_v7 = vpop.f32.mrb[8].mxu0  ;;  %1757 = vmatpush1.bf16.msra.mxu1 %v1839_v40 }
 0x111   : > { %v572_v8 = vadd.f32 %v1678_v7, %v1555_v42  ;;  %v563_v9 = vpop.f32.mrb[9].mxu0  ;;  %1750 = vmatprep.subr.bf16.mxu1 %v2272_v41 }
 0x112   : > { %v564_v10 = vadd.f32 %v1555_v42, %v563_v9  ;;  %v1679_v11 = vpop.f32.mrb[10].mxu0  ;;  %1704 = vmatprep.mubr.bf16.mxu1 %v612_v6 }
 0x113   : > { %v575_v12 = vadd.f32 %v1679_v11, %v1555_v42  ;;  %v566_v13 = vpop.f32.mrb[11].mxu0  ;;  %1705 = vmatmul.mubr.bf16.gmra.mrb[4].mxu1 %v613_v5  ;;  %v604_v15 = vmax.f32 %v572_v8, 0.0 }
 0x114   : > { %v567_v14 = vadd.f32 %v1555_v42, %v566_v13  ;;  %v602_v17 = vmax.f32 %v564_v10, 0.0 }
 0x115   : > { %v605_v16 = vmax.f32 %v575_v12, 0.0 }
 0x116   : > { %v603_v18 = vmax.f32 %v567_v14, 0.0 }
 0x117   : > { %v615_v19 = vpack.c.bf16 %v605_v16, %v604_v15 }
 0x118   : > { %v614_v20 = vpack.c.bf16 %v603_v18, %v602_v17  ;;  %v1682_v21 = vpop.f32.mrb[12].mxu0 }
 0x119   : > { %v588_v22 = vadd.f32 %v1682_v21, %v1555_v42  ;;  %v579_v23 = vpop.f32.mrb[13].mxu0 }
 0x11a   : > { %v580_v24 = vadd.f32 %v1555_v42, %v579_v23  ;;  %v1683_v25 = vpop.f32.mrb[14].mxu0  ;;  %1708 = vmatprep.mubr.bf16.mxu1 %v614_v20 }
 0x11b   : > { %v608_v26 = vmax.f32 %v588_v22, 0.0  ;;  %v591_v27 = vadd.f32 %v1683_v25, %v1555_v42  ;;  %v582_v28 = vpop.f32.mrb[15].mxu0  ;;  %1709 = vmatmul.mubr.bf16.gmra.mrb[8].mxu1 %v615_v19 }
 0x11c   : > { %v606_v29 = vmax.f32 %v580_v24, 0.0  ;;  %v583_v30 = vadd.f32 %v1555_v42, %v582_v28  ;;  %v2278_v42 = vld [vmem:[%s2614_s7 + $0x20] ss:$8 sps:$4 sm:$0xff]  }
 0x11d   : > { %v609_v31 = vmax.f32 %v591_v27, 0.0  ;;  %1758 = vmatpush1.bf16.msra.mxu1 %v2278_v42 }
 0x11e   : > { %v607_v32 = vmax.f32 %v583_v30, 0.0  ;;  %1751 = vmatprep.subr.bf16.mxu1 %v2283_v43 }
 0x11f   : > { %v617_v33 = vpack.c.bf16 %v609_v31, %v608_v26 }
 0x120   : > { %v616_v34 = vpack.c.bf16 %v607_v32, %v606_v29 }
 0x121   : > { %1759 = vmatpush1.bf16.msra.mxu1 %v2290_v44 }
 0x122   : > { %1712 = vmatprep.mubr.bf16.mxu1 %v616_v34  ;;  %1752 = vmatprep.subr.bf16.mxu1 %v2295_v45 }
 0x123   : > { %1713 = vmatmul.mubr.bf16.gmra.mrb[12].mxu1 %v617_v33 }
 0x125   : > { %1760 = vmatpush1.bf16.msra.mxu1 %v2302_v46 }
 0x126   : > { %1753 = vmatprep.subr.bf16.mxu1 %v2307_v47 }
 0x129   : > { %1761 = vmatpush1.bf16.msra.mxu1 %v2314_v48 }
 0x1de   : > { %v1702_v50 = vpop.f32.mrb[0].mxu1 }
 0x1df   : > { %v732_v51 = vadd.f32 %v1702_v50, %v2321_v49  ;;  %v723_v52 = vpop.f32.mrb[1].mxu1 }
 0x1e0   : > { %v724_v53 = vadd.f32 %v2321_v49, %v723_v52  ;;  %v1703_v54 = vpop.f32.mrb[2].mxu1 }
 0x1e1   : > { %v788_v55 = vmax.f32 %v732_v51, 0.0  ;;  %v735_v56 = vadd.f32 %v1703_v54, %v2321_v49  ;;  %v726_v57 = vpop.f32.mrb[3].mxu1 }
 0x1e2   : > { %v786_v58 = vmax.f32 %v724_v53, 0.0  ;;  %v727_v59 = vadd.f32 %v2321_v49, %v726_v57 }
 0x1e3   : > { %804 = vst [vmem:[%s2332_s26 + $0x10] sm:$0xff] %v788_v55  ;;  %v789_v60 = vmax.f32 %v735_v56, 0.0 }
 0x1e4   : > { %802 = vst [vmem:[%s2332_s26] sm:$0xff] %v786_v58  ;;  %v787_v61 = vmax.f32 %v727_v59, 0.0 }
 0x1e5   : > { %805 = vst [vmem:[%s2332_s26 + $0x18] sm:$0xff] %v789_v60  ;;  %v819_v62 = vpack.c.bf16 %v789_v60, %v788_v55 }
 0x1e6   : > { %803 = vst [vmem:[%s2332_s26 + $0x8] sm:$0xff] %v787_v61  ;;  %v818_v63 = vpack.c.bf16 %v787_v61, %v786_v58  ;;  %v1706_v0 = vpop.f32.mrb[4].mxu1 }
 0x1e7   : > { %v748_v1 = vadd.f32 %v1706_v0, %v2321_v49  ;;  %v739_v2 = vpop.f32.mrb[5].mxu1 }
 0x1e8   : > { %v740_v3 = vadd.f32 %v2321_v49, %v739_v2  ;;  %v1707_v4 = vpop.f32.mrb[6].mxu1  ;;  %1732 = vmatprep.mubr.bf16.mxu0 %v818_v63 }
 0x1e9   : > { %v792_v5 = vmax.f32 %v748_v1, 0.0  ;;  %v751_v6 = vadd.f32 %v1707_v4, %v2321_v49  ;;  %v742_v7 = vpop.f32.mrb[7].mxu1  ;;  %1733 = vmatmul.mubr.bf16.vlgmr.msra.gmra.mrb[16].mxu0 %v819_v62 }
 0x1ea   : > { %v790_v8 = vmax.f32 %v740_v3, 0.0  ;;  %v743_v9 = vadd.f32 %v2321_v49, %v742_v7  ;;  %1127 = vmatpush1.bf16.msra.mxu0 %v1836_v38 }
 0x1eb   : > { %808 = vst [vmem:[%s2332_s26 + $0x30] sm:$0xff] %v792_v5  ;;  %v793_v10 = vmax.f32 %v751_v6, 0.0  ;;  %1128 = vmatprep.subr.bf16.mxu0 %v1841_v39 }
 0x1ec   : > { %806 = vst [vmem:[%s2332_s26 + $0x20] sm:$0xff] %v790_v8  ;;  %v791_v11 = vmax.f32 %v743_v9, 0.0 }
 0x1ed   : > { %809 = vst [vmem:[%s2332_s26 + $0x38] sm:$0xff] %v793_v10  ;;  %v821_v12 = vpack.c.bf16 %v793_v10, %v792_v5 }
 0x1ee   : > { %807 = vst [vmem:[%s2332_s26 + $0x28] sm:$0xff] %v791_v11  ;;  %v820_v13 = vpack.c.bf16 %v791_v11, %v790_v8  ;;  %v1710_v14 = vpop.f32.mrb[8].mxu1  ;;  %1129 = vmatpush1.bf16.msra.mxu0 %v1839_v40 }
 0x1ef   : > { %v764_v15 = vadd.f32 %v1710_v14, %v2321_v49  ;;  %v755_v16 = vpop.f32.mrb[9].mxu1  ;;  %1130 = vmatprep.subr.bf16.mxu0 %v2272_v41 }
 0x1f0   : > { %v756_v17 = vadd.f32 %v2321_v49, %v755_v16  ;;  %v1711_v18 = vpop.f32.mrb[10].mxu1  ;;  %1736 = vmatprep.mubr.bf16.mxu0 %v820_v13 }
 0x1f1   : > { %v796_v19 = vmax.f32 %v764_v15, 0.0  ;;  %v767_v20 = vadd.f32 %v1711_v18, %v2321_v49  ;;  %v758_v21 = vpop.f32.mrb[11].mxu1  ;;  %1737 = vmatmul.mubr.bf16.gmra.mrb[20].mxu0 %v821_v12 }
 0x1f2   : > { %v794_v22 = vmax.f32 %v756_v17, 0.0  ;;  %v759_v23 = vadd.f32 %v2321_v49, %v758_v21  ;;  %1131 = vmatpush1.bf16.msra.mxu0 %v2278_v42  ;;  %v1856_v42 = vld [vmem:[%s2614_s7 + $0x64] ss:$8 sps:$4 sm:$0xff]  }
 0x1f3   : > { %812 = vst [vmem:[%s2332_s26 + $0x50] sm:$0xff] %v796_v19  ;;  %v797_v24 = vmax.f32 %v767_v20, 0.0  ;;  %1132 = vmatprep.subr.bf16.mxu0 %v2283_v43  ;;  %v1854_v43 = vld [vmem:[%s2614_s7 + $0x60] ss:$8 sps:$4 sm:$0xff]   ;;  %1754 = vmatprep.subr.bf16.mxu1 %v1856_v42 }
 0x1f4   : > { %810 = vst [vmem:[%s2332_s26 + $0x40] sm:$0xff] %v794_v22  ;;  %v795_v25 = vmax.f32 %v759_v23, 0.0  ;;  %1762 = vmatpush1.bf16.msra.mxu1 %v1854_v43 }
 0x1f5   : > { %813 = vst [vmem:[%s2332_s26 + $0x58] sm:$0xff] %v797_v24  ;;  %v823_v26 = vpack.c.bf16 %v797_v24, %v796_v19 }
 0x1f6   : > { %811 = vst [vmem:[%s2332_s26 + $0x48] sm:$0xff] %v795_v25  ;;  %v822_v27 = vpack.c.bf16 %v795_v25, %v794_v22  ;;  %v1714_v28 = vpop.f32.mrb[12].mxu1  ;;  %1133 = vmatpush1.bf16.msra.mxu0 %v2290_v44  ;;  %v1859_v44 = vld [vmem:[%s2614_s7 + $0x74] ss:$8 sps:$4 sm:$0xff]  }
 0x1f7   : > { %v780_v29 = vadd.f32 %v1714_v28, %v2321_v49  ;;  %v771_v30 = vpop.f32.mrb[13].mxu1  ;;  %1134 = vmatprep.subr.bf16.mxu0 %v2295_v45  ;;  %v1857_v45 = vld [vmem:[%s2614_s7 + $0x70] ss:$8 sps:$4 sm:$0xff]   ;;  %1755 = vmatprep.subr.bf16.mxu1 %v1859_v44 }
 0x1f8   : > { %v772_v31 = vadd.f32 %v2321_v49, %v771_v30  ;;  %v1715_v32 = vpop.f32.mrb[14].mxu1  ;;  %1740 = vmatprep.mubr.bf16.mxu0 %v822_v27  ;;  %1763 = vmatpush1.bf16.msra.mxu1 %v1857_v45 }
 0x1f9   : > { %v800_v33 = vmax.f32 %v780_v29, 0.0  ;;  %v783_v34 = vadd.f32 %v1715_v32, %v2321_v49  ;;  %v774_v35 = vpop.f32.mrb[15].mxu1  ;;  %1741 = vmatmul.mubr.bf16.gmra.mrb[24].mxu0 %v823_v26 }
 0x1fa   : > { %v798_v36 = vmax.f32 %v772_v31, 0.0  ;;  %v775_v37 = vadd.f32 %v2321_v49, %v774_v35  ;;  %1135 = vmatpush1.bf16.msra.mxu0 %v2302_v46  ;;  %v2048_v46 = vmov 0  }
 0x1fb   : > { %816 = vst [vmem:[%s2332_s26 + $0x70] sm:$0xff] %v800_v33  ;;  %v801_v38 = vmax.f32 %v783_v34, 0.0  ;;  %1136 = vmatprep.subr.bf16.mxu0 %v2307_v47  ;;  %1188 = vmatprep.mubr.bf16.mxu1 %v2048_v46  ;;  %v1577_v47 = vld [vmem:[%s2613_s6] ss:$0 sm:$0xff] }
 0x1fc   : > { %814 = vst [vmem:[%s2332_s26 + $0x60] sm:$0xff] %v798_v36  ;;  %v799_v39 = vmax.f32 %v775_v37, 0.0 }
 0x1fd   : > { %817 = vst [vmem:[%s2332_s26 + $0x78] sm:$0xff] %v801_v38  ;;  %v825_v40 = vpack.c.bf16 %v801_v38, %v800_v33 }
 0x1fe   : > { %815 = vst [vmem:[%s2332_s26 + $0x68] sm:$0xff] %v799_v39  ;;  %v824_v41 = vpack.c.bf16 %v799_v39, %v798_v36  ;;  %1137 = vmatpush1.bf16.msra.mxu0 %v2314_v48 }
 0x1ff   : > { %1138 = vmatprep.subr.bf16.mxu0 %v1856_v42 }
 0x200   : > { %1744 = vmatprep.mubr.bf16.mxu0 %v824_v41 }
 0x201   : > { %1745 = vmatmul.mubr.bf16.gmra.mrb[28].mxu0 %v825_v40  ;;  %v1036_v40 = vlaneseq }
 0x202   : > { %1139 = vmatpush1.bf16.msra.mxu0 %v1854_v43  ;;  %1158 = vmatprep.mubr.bf16.mxu0 %v2048_v46  ;;  %v1034_v43 = vld [vmem:[%s2615_s8] sm:$0x3] }
 0x203   : > { %1140 = vmatprep.subr.bf16.mxu0 %v1859_v44  ;;  %v1037_v41 = vshrl.u32 %v1036_v40, 7 }
 0x205   : > { %v1038_v42 = vsub.s32 0, %v1037_v41  ;;  %v1042_v44 = vsub.s32 1, %v1037_v41 }
 0x206   : > { %1141 = vmatpush1.bf16.msra.mxu0 %v1857_v45 }
 0x207   : > { %v2396_v45 = vrot.slane %v1034_v43, %v1038_v42 }
 0x2bc   : > { %v1734_v48 = vpop.f32.mrb[16].mxu0 }
 0x2bd   : > { %v940_v49 = vadd.f32 %v1734_v48, %v1577_v47  ;;  %v931_v50 = vpop.f32.mrb[17].mxu0 }
 0x2be   : > { %v932_v51 = vadd.f32 %v1577_v47, %v931_v50  ;;  %v1735_v52 = vpop.f32.mrb[18].mxu0 }
 0x2bf   : > { %v943_v53 = vadd.f32 %v1735_v52, %v1577_v47  ;;  %v934_v54 = vpop.f32.mrb[19].mxu0  ;;  %v996_v56 = vmax.f32 %v940_v49, 0.0 }
 0x2c0   : > { %v935_v55 = vadd.f32 %v1577_v47, %v934_v54  ;;  %v994_v58 = vmax.f32 %v932_v51, 0.0 }
 0x2c1   : > { %v997_v57 = vmax.f32 %v943_v53, 0.0 }
 0x2c2   : > { %v995_v59 = vmax.f32 %v935_v55, 0.0 }
 0x2c3   : > { %v1011_v60 = vpack.c.bf16 %v997_v57, %v996_v56 }
 0x2c4   : > { %v1010_v61 = vpack.c.bf16 %v995_v59, %v994_v58  ;;  %v1738_v62 = vpop.f32.mrb[20].mxu0 }
 0x2c5   : > { %v956_v63 = vadd.f32 %v1738_v62, %v1577_v47  ;;  %v947_v0 = vpop.f32.mrb[21].mxu0 }
 0x2c6   : > { %v948_v1 = vadd.f32 %v1577_v47, %v947_v0  ;;  %v1739_v2 = vpop.f32.mrb[22].mxu0  ;;  %1159 = vmatmul.mubr.bf16.vlgmr.msra.gmra.mrb[32].mxu0 %v1010_v61 }
 0x2c7   : > { %v959_v3 = vadd.f32 %v1739_v2, %v1577_v47  ;;  %v950_v4 = vpop.f32.mrb[23].mxu0  ;;  %1168 = vmatprep.mubr.bf16.mxu0 %v2048_v46  ;;  %v1000_v6 = vmax.f32 %v956_v63, 0.0 }
 0x2c8   : > { %v951_v5 = vadd.f32 %v1577_v47, %v950_v4  ;;  %v998_v8 = vmax.f32 %v948_v1, 0.0 }
 0x2c9   : > { %v1001_v7 = vmax.f32 %v959_v3, 0.0 }
 0x2ca   : > { %v999_v9 = vmax.f32 %v951_v5, 0.0 }
 0x2cb   : > { %v1013_v10 = vpack.c.bf16 %v1001_v7, %v1000_v6 }
 0x2cc   : > { %v1012_v11 = vpack.c.bf16 %v999_v9, %v998_v8  ;;  %v1742_v12 = vpop.f32.mrb[24].mxu0 }
 0x2cd   : > { %v972_v13 = vadd.f32 %v1742_v12, %v1577_v47  ;;  %v963_v14 = vpop.f32.mrb[25].mxu0  ;;  %1189 = vmatmul.mubr.bf16.vlgmr.msra.gmra.mrb[16].mxu1 %v1013_v10 }
 0x2ce   : > { %v964_v15 = vadd.f32 %v1577_v47, %v963_v14  ;;  %v1743_v16 = vpop.f32.mrb[26].mxu0  ;;  %1169 = vmatmul.mubr.bf16.gmra.mrb[36].mxu0 %v1011_v60  ;;  %1198 = vmatprep.mubr.bf16.mxu1 %v2048_v46 }
 0x2cf   : > { %v975_v17 = vadd.f32 %v1743_v16, %v1577_v47  ;;  %v966_v18 = vpop.f32.mrb[27].mxu0  ;;  %1178 = vmatprep.mubr.bf16.mxu0 %v2048_v46  ;;  %v1004_v20 = vmax.f32 %v972_v13, 0.0 }
 0x2d0   : > { %v967_v19 = vadd.f32 %v1577_v47, %v966_v18  ;;  %v1002_v22 = vmax.f32 %v964_v15, 0.0 }
 0x2d1   : > { %v1005_v21 = vmax.f32 %v975_v17, 0.0 }
 0x2d2   : > { %v1003_v23 = vmax.f32 %v967_v19, 0.0 }
 0x2d3   : > { %v1015_v24 = vpack.c.bf16 %v1005_v21, %v1004_v20 }
 0x2d4   : > { %v1014_v25 = vpack.c.bf16 %v1003_v23, %v1002_v22  ;;  %v1746_v26 = vpop.f32.mrb[28].mxu0 }
 0x2d5   : > { %v988_v27 = vadd.f32 %v1746_v26, %v1577_v47  ;;  %v979_v28 = vpop.f32.mrb[29].mxu0 }
 0x2d6   : > { %v980_v29 = vadd.f32 %v1577_v47, %v979_v28  ;;  %v1747_v30 = vpop.f32.mrb[30].mxu0  ;;  %1179 = vmatmul.mubr.bf16.gmra.mrb[40].mxu0 %v1012_v11  ;;  %1199 = vmatmul.mubr.bf16.gmra.mrb[20].mxu1 %v1014_v25 }
 0x2d7   : > { %v991_v31 = vadd.f32 %v1747_v30, %v1577_v47  ;;  %v982_v32 = vpop.f32.mrb[31].mxu0  ;;  %1208 = vmatprep.mubr.bf16.mxu1 %v2048_v46  ;;  %v1008_v34 = vmax.f32 %v988_v27, 0.0 }
 0x2d8   : > { %v983_v33 = vadd.f32 %v1577_v47, %v982_v32  ;;  %v1006_v36 = vmax.f32 %v980_v29, 0.0  ;;  %v2398_v47 = vrot.slane %v1034_v43, %v1042_v44 }
 0x2d9   : > { %v1009_v35 = vmax.f32 %v991_v31, 0.0 }
 0x2da   : > { %v1007_v37 = vmax.f32 %v983_v33, 0.0 }
 0x2db   : > { %v1017_v38 = vpack.c.bf16 %v1009_v35, %v1008_v34 }
 0x2dc   : > { %v1016_v39 = vpack.c.bf16 %v1007_v37, %v1006_v36 }
 0x2de   : > { %1209 = vmatmul.mubr.bf16.gmra.mrb[24].mxu1 %v1015_v24 }
 0x2df   : > { %1218 = vmatprep.mubr.bf16.mxu1 %v2048_v46 }
 0x2e6   : > { %1219 = vmatmul.mubr.bf16.gmra.mrb[28].mxu1 %v1016_v39 }
 0x2e7   : > { %1228 = vmatprep.mubr.bf16.mxu1 %v2048_v46 }
 0x2ee   : > { %1229 = vmatmul.mubr.bf16.gmra.mrb[32].mxu1 %v1017_v38 }
 0x399   : > { %v1160_v48 = vpop.f32.mrb[32].mxu0 }
 0x39a   : > { %v1161_v49 = vadd.f32 %v1160_v48, %v2396_v45  ;;  %v1162_v50 = vpop.f32.mrb[33].mxu0 }
 0x39b   : > { %v1163_v51 = vadd.f32 %v1162_v50, %v2398_v47  ;;  %v1164_v46 = vpop.f32.mrb[34].mxu0 }
 0x39c   : > { %v1239_v52 = vmul.f32 1.442695, %v1161_v49  ;;  %v1165_v53 = vadd.f32 %v1164_v46, %v2396_v45  ;;  %v1166_v54 = vpop.f32.mrb[35].mxu0 }
 0x39d   : > { %v1287_v55 = vmul.f32 0.5, %v1163_v51  ;;  %v1167_v56 = vadd.f32 %v1166_v54, %v2398_v47 }
 0x39e   : > { %1860 = vpow2.f32 %v1239_v52  ;;  %v1241_v57 = vmul.f32 1.442695, %v1165_v53 }
 0x39f   : > { %1862 = vtanh.f32 %v1287_v55  ;;  %v1288_v58 = vmul.f32 0.5, %v1167_v56 }
 0x3a0   : > { %1864 = vpow2.f32 %v1241_v57  ;;  %v1190_v59 = vpop.f32.mrb[16].mxu1 }
 0x3a1   : > { %1866 = vtanh.f32 %v1288_v58  ;;  %v1191_v60 = vadd.f32 %v1190_v59, %v2396_v45  ;;  %v1170_v61 = vpop.f32.mrb[36].mxu0  ;;  %v1192_v62 = vpop.f32.mrb[17].mxu1 }
 0x3a2   : > { %v1171_v63 = vadd.f32 %v1170_v61, %v2396_v45  ;;  %v1193_v0 = vadd.f32 %v1192_v62, %v2398_v47  ;;  %v1172_v1 = vpop.f32.mrb[37].mxu0  ;;  %v1194_v2 = vpop.f32.mrb[18].mxu1 }
 0x3a3   : > { %v1251_v3 = vmul.f32 1.442695, %v1191_v60  ;;  %v1173_v4 = vadd.f32 %v1172_v1, %v2398_v47  ;;  %v1195_v5 = vadd.f32 %v1194_v2, %v2396_v45  ;;  %v1174_v6 = vpop.f32.mrb[38].mxu0  ;;  %v1196_v7 = vpop.f32.mrb[19].mxu1 }
 0x3a4   : > { %v1243_v8 = vmul.f32 1.442695, %v1171_v63  ;;  %v1293_v9 = vmul.f32 0.5, %v1193_v0  ;;  %v1175_v10 = vadd.f32 %v1174_v6, %v2396_v45  ;;  %v1197_v11 = vadd.f32 %v1196_v7, %v2398_v47  ;;  %v1176_v12 = vpop.f32.mrb[39].mxu0 }
 0x3a5   : > { %1868 = vpow2.f32 %v1251_v3  ;;  %v1289_v13 = vmul.f32 0.5, %v1173_v4  ;;  %v1253_v14 = vmul.f32 1.442695, %v1195_v5  ;;  %v1177_v15 = vadd.f32 %v1176_v12, %v2398_v47 }
 0x3a6   : > { %1870 = vpow2.f32 %v1243_v8  ;;  %v1245_v16 = vmul.f32 1.442695, %v1175_v10  ;;  %v1294_v17 = vmul.f32 0.5, %v1197_v11 }
 0x3a7   : > { %1872 = vtanh.f32 %v1293_v9  ;;  %v1290_v19 = vmul.f32 0.5, %v1177_v15 }
 0x3a8   : > { %v1861_v18 = vpop.eup %1860  ;;  %1874 = vtanh.f32 %v1289_v13 }
 0x3a9   : > { %v1863_v20 = vpop.eup %1862  ;;  %1271 = vst [vmem:[%s2413_s22] sm:$0xff] %v1861_v18  ;;  %1876 = vpow2.f32 %v1253_v14  ;;  %v1180_v21 = vpop.f32.mrb[40].mxu0 }
 0x3aa   : > { %v1200_v22 = vpop.f32.mrb[20].mxu1  ;;  %v1865_v23 = vpop.eup %1864  ;;  %v1319_v24 = vadd.f32 1.0, %v1863_v20  ;;  %1878 = vpow2.f32 %v1245_v16  ;;  %v1181_v25 = vadd.f32 %v1180_v21, %v2396_v45 }
 0x3ab   : > { %v1201_v26 = vadd.f32 %v1200_v22, %v2396_v45  ;;  %v1182_v27 = vpop.f32.mrb[41].mxu0  ;;  %v1202_v28 = vpop.f32.mrb[21].mxu1  ;;  %1272 = vst [vmem:[%s2413_s22 + $0x8] sm:$0xff] %v1865_v23  ;;  %1880 = vtanh.f32 %v1294_v17 }
 0x3ac   : > { %v1867_v29 = vpop.eup %1866  ;;  %v1183_v30 = vadd.f32 %v1182_v27, %v2398_v47  ;;  %v1203_v31 = vadd.f32 %v1202_v28, %v2398_v47  ;;  %v1184_v32 = vpop.f32.mrb[42].mxu0  ;;  %v1335_v34 = vmul.f32 0.5, %v1319_v24  ;;  %1882 = vtanh.f32 %v1290_v19 }
 0x3ad   : > { %v1204_v33 = vpop.f32.mrb[22].mxu1  ;;  %v1320_v35 = vadd.f32 1.0, %v1867_v29  ;;  %v1247_v36 = vmul.f32 1.442695, %v1181_v25  ;;  %v1186_v37 = vpop.f32.mrb[43].mxu0  ;;  %v1185_v42 = vadd.f32 %v1184_v32, %v2396_v45 }
 0x3ae   : > { %v1206_v38 = vpop.f32.mrb[23].mxu1  ;;  %v1255_v39 = vmul.f32 1.442695, %v1201_v26  ;;  %v1291_v40 = vmul.f32 0.5, %v1183_v30  ;;  %v1295_v41 = vmul.f32 0.5, %v1203_v31  ;;  %1351 = vst [vmem:[%s2423_s12] sm:$0xff] %v1335_v34  ;;  %v1205_v44 = vadd.f32 %v1204_v33, %v2396_v45 }
 0x3af   : > { %v1336_v43 = vmul.f32 0.5, %v1320_v35  ;;  %1884 = vpow2.f32 %v1247_v36  ;;  %v1187_v48 = vadd.f32 %v1186_v37, %v2398_v47  ;;  %v1869_v49 = vpop.eup %1868  ;;  %v1249_v50 = vmul.f32 1.442695, %v1185_v42 }
 0x3b0   : > { %1886 = vpow2.f32 %v1255_v39  ;;  %v1207_v51 = vadd.f32 %v1206_v38, %v2398_v47  ;;  %v1871_v46 = vpop.eup %1870  ;;  %1277 = vst [vmem:[%s2413_s22 + $0x30] sm:$0xff] %v1869_v49  ;;  %v1257_v52 = vmul.f32 1.442695, %v1205_v44 }
 0x3b1   : > { %1352 = vst [vmem:[%s2423_s12 + $0x8] sm:$0xff] %v1336_v43  ;;  %1888 = vtanh.f32 %v1291_v40  ;;  %v1292_v53 = vmul.f32 0.5, %v1187_v48  ;;  %v1873_v54 = vpop.eup %1872  ;;  %1273 = vst [vmem:[%s2413_s22 + $0x10] sm:$0xff] %v1871_v46  ;;  %v1210_v56 = vpop.f32.mrb[24].mxu1 }
 0x3b2   : > { %1890 = vtanh.f32 %v1295_v41  ;;  %v1296_v55 = vmul.f32 0.5, %v1207_v51  ;;  %v1875_v57 = vpop.eup %1874  ;;  %v1325_v58 = vadd.f32 1.0, %v1873_v54  ;;  %v1211_v59 = vadd.f32 %v1210_v56, %v2396_v45  ;;  %v1212_v60 = vpop.f32.mrb[25].mxu1 }
 0x3b3   : > { %1892 = vpow2.f32 %v1249_v50  ;;  %v1877_v61 = vpop.eup %1876  ;;  %v1321_v62 = vadd.f32 1.0, %v1875_v57  ;;  %v1213_v63 = vadd.f32 %v1212_v60, %v2398_v47  ;;  %v1214_v0 = vpop.f32.mrb[26].mxu1 }
 0x3b4   : > { %1894 = vpow2.f32 %v1257_v52  ;;  %v1879_v1 = vpop.eup %1878  ;;  %v1341_v2 = vmul.f32 0.5, %v1325_v58  ;;  %1278 = vst [vmem:[%s2413_s22 + $0x38] sm:$0xff] %v1877_v61  ;;  %v1259_v3 = vmul.f32 1.442695, %v1211_v59  ;;  %v1215_v4 = vadd.f32 %v1214_v0, %v2396_v45  ;;  %v1216_v5 = vpop.f32.mrb[27].mxu1 }
 0x3b5   : > { %1896 = vtanh.f32 %v1292_v53  ;;  %v1881_v6 = vpop.eup %1880  ;;  %v1337_v7 = vmul.f32 0.5, %v1321_v62  ;;  %1274 = vst [vmem:[%s2413_s22 + $0x18] sm:$0xff] %v1879_v1  ;;  %v1297_v8 = vmul.f32 0.5, %v1213_v63  ;;  %v1217_v9 = vadd.f32 %v1216_v5, %v2398_v47 }
 0x3b6   : > { %1898 = vtanh.f32 %v1296_v55  ;;  %v1883_v10 = vpop.eup %1882  ;;  %1357 = vst [vmem:[%s2423_s12 + $0x30] sm:$0xff] %v1341_v2  ;;  %v1326_v11 = vadd.f32 1.0, %v1881_v6  ;;  %v1261_v12 = vmul.f32 1.442695, %v1215_v4 }
 0x3b7   : > { %1900 = vpow2.f32 %v1259_v3  ;;  %1353 = vst [vmem:[%s2423_s12 + $0x10] sm:$0xff] %v1337_v7  ;;  %v1322_v13 = vadd.f32 1.0, %v1883_v10  ;;  %v1298_v14 = vmul.f32 0.5, %v1217_v9 }
 0x3b8   : > { %1902 = vtanh.f32 %v1297_v8  ;;  %v1342_v16 = vmul.f32 0.5, %v1326_v11 }
 0x3b9   : > { %v1885_v15 = vpop.eup %1884  ;;  %1904 = vpow2.f32 %v1261_v12  ;;  %v1338_v18 = vmul.f32 0.5, %v1322_v13  ;;  %v1220_v19 = vpop.f32.mrb[28].mxu1 }
 0x3ba   : > { %v1887_v17 = vpop.eup %1886  ;;  %1275 = vst [vmem:[%s2413_s22 + $0x20] sm:$0xff] %v1885_v15  ;;  %1906 = vtanh.f32 %v1298_v14  ;;  %1358 = vst [vmem:[%s2423_s12 + $0x38] sm:$0xff] %v1342_v16  ;;  %v1221_v21 = vadd.f32 %v1220_v19, %v2396_v45  ;;  %v1222_v22 = vpop.f32.mrb[29].mxu1 }
 0x3bb   : > { %v1889_v20 = vpop.eup %1888  ;;  %1279 = vst [vmem:[%s2413_s22 + $0x40] sm:$0xff] %v1887_v17  ;;  %1354 = vst [vmem:[%s2423_s12 + $0x18] sm:$0xff] %v1338_v18  ;;  %v1223_v25 = vadd.f32 %v1222_v22, %v2398_v47  ;;  %v1224_v26 = vpop.f32.mrb[30].mxu1 }
 0x3bc   : > { %v1891_v23 = vpop.eup %1890  ;;  %v1323_v24 = vadd.f32 1.0, %v1889_v20  ;;  %v1263_v29 = vmul.f32 1.442695, %v1221_v21  ;;  %v1225_v30 = vadd.f32 %v1224_v26, %v2396_v45  ;;  %v1226_v31 = vpop.f32.mrb[31].mxu1 }
 0x3bd   : > { %v1893_v27 = vpop.eup %1892  ;;  %v1327_v28 = vadd.f32 1.0, %v1891_v23  ;;  %v1299_v34 = vmul.f32 0.5, %v1223_v25  ;;  %v1227_v35 = vadd.f32 %v1226_v31, %v2398_v47 }
 0x3be   : > { %v1895_v32 = vpop.eup %1894  ;;  %v1339_v33 = vmul.f32 0.5, %v1323_v24  ;;  %1276 = vst [vmem:[%s2413_s22 + $0x28] sm:$0xff] %v1893_v27  ;;  %1908 = vpow2.f32 %v1263_v29  ;;  %v1265_v38 = vmul.f32 1.442695, %v1225_v30 }
 0x3bf   : > { %v1897_v36 = vpop.eup %1896  ;;  %v1343_v37 = vmul.f32 0.5, %v1327_v28  ;;  %1280 = vst [vmem:[%s2413_s22 + $0x48] sm:$0xff] %v1895_v32  ;;  %1910 = vtanh.f32 %v1299_v34  ;;  %v1300_v41 = vmul.f32 0.5, %v1227_v35 }
 0x3c0   : > { %v1899_v39 = vpop.eup %1898  ;;  %1355 = vst [vmem:[%s2423_s12 + $0x20] sm:$0xff] %v1339_v33  ;;  %v1324_v40 = vadd.f32 1.0, %v1897_v36  ;;  %1912 = vpow2.f32 %v1265_v38 }
 0x3c1   : > { %v1901_v42 = vpop.eup %1900  ;;  %1359 = vst [vmem:[%s2423_s12 + $0x40] sm:$0xff] %v1343_v37  ;;  %v1328_v43 = vadd.f32 1.0, %v1899_v39  ;;  %1914 = vtanh.f32 %v1300_v41  ;;  %v1230_v49 = vpop.f32.mrb[32].mxu1 }
 0x3c2   : > { %v1903_v44 = vpop.eup %1902  ;;  %v1340_v48 = vmul.f32 0.5, %v1324_v40  ;;  %1281 = vst [vmem:[%s2413_s22 + $0x50] sm:$0xff] %v1901_v42  ;;  %v1231_v52 = vadd.f32 %v1230_v49, %v2396_v45  ;;  %v1232_v53 = vpop.f32.mrb[33].mxu1 }
 0x3c3   : > { %v1905_v50 = vpop.eup %1904  ;;  %v1344_v51 = vmul.f32 0.5, %v1328_v43  ;;  %v1329_v46 = vadd.f32 1.0, %v1903_v44  ;;  %v1233_v55 = vadd.f32 %v1232_v53, %v2398_v47  ;;  %v1234_v56 = vpop.f32.mrb[34].mxu1 }
 0x3c4   : > { %v1907_v54 = vpop.eup %1906  ;;  %1356 = vst [vmem:[%s2423_s12 + $0x28] sm:$0xff] %v1340_v48  ;;  %1282 = vst [vmem:[%s2413_s22 + $0x58] sm:$0xff] %v1905_v50  ;;  %v1267_v59 = vmul.f32 1.442695, %v1231_v52  ;;  %v1235_v60 = vadd.f32 %v1234_v56, %v2396_v45  ;;  %v1236_v61 = vpop.f32.mrb[35].mxu1 }
 0x3c5   : > { %1360 = vst [vmem:[%s2423_s12 + $0x48] sm:$0xff] %v1344_v51  ;;  %v1345_v57 = vmul.f32 0.5, %v1329_v46  ;;  %v1330_v58 = vadd.f32 1.0, %v1907_v54  ;;  %v1301_v62 = vmul.f32 0.5, %v1233_v55  ;;  %v1237_v63 = vadd.f32 %v1236_v61, %v2398_v47 }
 0x3c6   : > { %1916 = vpow2.f32 %v1267_v59  ;;  %v1269_v1 = vmul.f32 1.442695, %v1235_v60 }
 0x3c7   : > { %1361 = vst [vmem:[%s2423_s12 + $0x50] sm:$0xff] %v1345_v57  ;;  %v1346_v0 = vmul.f32 0.5, %v1330_v58  ;;  %1918 = vtanh.f32 %v1301_v62  ;;  %v1302_v2 = vmul.f32 0.5, %v1237_v63 }
 0x3c8   : > { %v1909_v3 = vpop.eup %1908  ;;  %1920 = vpow2.f32 %v1269_v1 }
 0x3c9   : > { %1362 = vst [vmem:[%s2423_s12 + $0x58] sm:$0xff] %v1346_v0  ;;  %v1911_v4 = vpop.eup %1910  ;;  %1283 = vst [vmem:[%s2413_s22 + $0x60] sm:$0xff] %v1909_v3  ;;  %1922 = vtanh.f32 %v1302_v2 }
 0x3ca   : > { %v1913_v45 = vpop.eup %1912  ;;  %v1331_v47 = vadd.f32 1.0, %v1911_v4 }
 0x3cb   : > { %v1915_v5 = vpop.eup %1914  ;;  %1284 = vst [vmem:[%s2413_s22 + $0x68] sm:$0xff] %v1913_v45 }
 0x3cc   : > { %v1347_v6 = vmul.f32 0.5, %v1331_v47  ;;  %v1332_v7 = vadd.f32 1.0, %v1915_v5 }
 0x3ce   : > { %1363 = vst [vmem:[%s2423_s12 + $0x60] sm:$0xff] %v1347_v6  ;;  %v1348_v8 = vmul.f32 0.5, %v1332_v7 }
 0x3d0   : > { %v1917_v9 = vpop.eup %1916  ;;  %1364 = vst [vmem:[%s2423_s12 + $0x68] sm:$0xff] %v1348_v8 }
 0x3d1   : > { %v1919_v10 = vpop.eup %1918  ;;  %1285 = vst [vmem:[%s2413_s22 + $0x70] sm:$0xff] %v1917_v9 }
 0x3d2   : > { %v1921_v11 = vpop.eup %1920  ;;  %v1333_v12 = vadd.f32 1.0, %v1919_v10 }
 0x3d3   : > { %v1923_v13 = vpop.eup %1922  ;;  %1286 = vst [vmem:[%s2413_s22 + $0x78] sm:$0xff] %v1921_v11 }
 0x3d4   : > { %v1349_v14 = vmul.f32 0.5, %v1333_v12  ;;  %v1334_v15 = vadd.f32 1.0, %v1923_v13 }
 0x3d5   : > { %1937 = shalt.err (!%p1934_p3)
}
 0x3d6   : > { %s1938_s0 = scalar_lea.hbm %s2475_s30, 2048  ;;  %s1942_s29 = scalar_lea.hbm %s2616_s9, 4096 }
 0x3d7   : > { %p1939_p4 = scmp.ne.s32.totalorder %s2475_s30, %s1938_s0  ;;  %p1943_p9 = scmp.lt.u32.totalorder %s2475_s30, %s2616_s9 }
 0x3d8   : > { %p1944_p10 = scmp.lt.u32.totalorder %s1942_s29, %s1938_s0  ;;  %p1946_p12 = scmp.lt.u32.totalorder %s1938_s0, %s2475_s30 }
 0x3d9   : > { %p1940_p7 = pnand %p1939_p4, %p2154_p5 }
 0x3da   : > { %p1945_p11 = por %p1944_p10, %p1943_p9 }
 0x3db   : > { %p1941_p8 = pneg %p1940_p7 }
 0x3dc   : > { %p1947_p13 = por %p1946_p12, %p1945_p11 }
 0x3de   : > { %p1948_p0 = pnand %p1947_p13, %p1941_p8 }
 0x3e0   : > { %1951 = shalt.err (!%p1948_p0)
}
 0x3e1   : > { %s2050_s3 = smov 128   ;;  %s2051_s15 = smov 8   ;;  %1365 = vst [vmem:[%s2423_s12 + $0x70] sm:$0xff] %v1349_v14  ;;  %v1350_v16 = vmul.f32 0.5, %v1334_v15 }
 0x3e2   : > { %1764 = dma.vmem_to_hbm [thread:$0]  (%p2154_p5), %s2477_s16, 2048, %s2475_s30, %s2485_s1, %s2050_s3, %s2050_s3, %s2051_s15  }
 0x3e3   : > { %s2517_s0 = scalar_lea.hbm %s2617_s10, %s2466_s25  ;;  %s2527_s2 = scalar_lea.hbm %s2618_s11, %s2466_s25  ;;  %1366 = vst [vmem:[%s2423_s12 + $0x78] sm:$0xff] %v1350_v16 }
 0x3e4   : > { %s2635_s4 = sshll.u32 %s2332_s26, 4  ;;  %s2636_s1 = sand.u32 1, %s2135_s21   ;;  %s2531_s4 = int_to_ptr.vmem [resolvable:$true] %s2635_s4 }
 0x3e5   : > { %s2536_s16 = scalar_lea.sflag [#allocation5], %s2636_s1  ;;  %s1952_s30 = scalar_lea.vmem %s2521_s14, 2048 }
 0x3e6   : > { %p1953_p1 = scmp.ne.s32.totalorder %s2521_s14, %s1952_s30  ;;  %s2052_s13 = smov [#allocation4]  }
 0x3e7   : > { %s1956_s24 = sshll.u32 %s2052_s13, 4  ;;  %s1957_s24 = int_to_ptr.vmem [resolvable:$false] %s1956_s24 }
 0x3e8   : > { %p1954_p2 = pnand %p1953_p1, %p2154_p5  ;;  %s1958_s22 = scalar_lea.vmem %s1957_s24, 4096 }
 0x3e9   : > { %p1959_p4 = scmp.lt.s32.totalorder %s2521_s14, %s1957_s24  ;;  %p1960_p7 = scmp.lt.s32.totalorder %s1958_s22, %s1952_s30 }
 0x3ea   : > { %p1955_p3 = pneg %p1954_p2 }
 0x3eb   : > { %p1961_p8 = por %p1960_p7, %p1959_p4 }
 0x3ed   : > { %p1962_p9 = pnand %p1961_p8, %p1955_p3 }
 0x3ef   : > { %1965 = shalt.err (!%p1962_p9)
}
 0x3f0   : > { %s1966_s21 = scalar_lea.hbm %s2517_s0, 2048  ;;  %s1970_s25 = scalar_lea.hbm %s2617_s10, 4096 }
 0x3f1   : > { %p1967_p10 = scmp.ne.s32.totalorder %s2517_s0, %s1966_s21  ;;  %p1971_p13 = scmp.lt.u32.totalorder %s2517_s0, %s2617_s10 }
 0x3f2   : > { %p1972_p0 = scmp.lt.u32.totalorder %s1970_s25, %s1966_s21  ;;  %p1974_p2 = scmp.lt.u32.totalorder %s1966_s21, %s2517_s0 }
 0x3f3   : > { %p1968_p11 = pnand %p1967_p10, %p2154_p5 }
 0x3f4   : > { %p1973_p1 = por %p1972_p0, %p1971_p13 }
 0x3f5   : > { %p1969_p12 = pneg %p1968_p11 }
 0x3f6   : > { %p1975_p3 = por %p1974_p2, %p1973_p1 }
 0x3f8   : > { %p1976_p4 = pnand %p1975_p3, %p1969_p12 }
 0x3fa   : > { %1979 = shalt.err (!%p1976_p4)
}
 0x3fb   : > { %1765 = dma.vmem_to_hbm [thread:$0]  (%p2154_p5), %s2521_s14, 2048, %s2517_s0, %s2536_s16, %s2050_s3, %s2050_s3, %s2051_s15  }
 0x3fc   : > { %s1980_s30 = scalar_lea.vmem %s2531_s4, 2048  ;;  %s2053_s13 = smov [#allocation6]  }
 0x3fd   : > { %p1981_p7 = scmp.ne.s32.totalorder %s2531_s4, %s1980_s30  ;;  %s1984_s24 = sshll.u32 %s2053_s13, 4  ;;  %s1985_s24 = int_to_ptr.vmem [resolvable:$false] %s1984_s24 }
 0x3fe   : > { %s1986_s22 = scalar_lea.vmem %s1985_s24, 4096  ;;  %p1987_p10 = scmp.lt.s32.totalorder %s2531_s4, %s1985_s24 }
 0x3ff   : > { %p1982_p8 = pnand %p1981_p7, %p2154_p5  ;;  %p1988_p11 = scmp.lt.s32.totalorder %s1986_s22, %s1980_s30 }
 0x401   : > { %p1983_p9 = pneg %p1982_p8  ;;  %p1989_p12 = por %p1988_p11, %p1987_p10 }
 0x403   : > { %p1990_p13 = pnand %p1989_p12, %p1983_p9 }
 0x405   : > { %1993 = shalt.err (!%p1990_p13)
}
 0x406   : > { %s1994_s14 = scalar_lea.hbm %s2527_s2, 2048  ;;  %s1998_s26 = scalar_lea.hbm %s2618_s11, 4096 }
 0x407   : > { %p1995_p0 = scmp.ne.s32.totalorder %s2527_s2, %s1994_s14  ;;  %p1999_p3 = scmp.lt.u32.totalorder %s2527_s2, %s2618_s11 }
 0x408   : > { %p2000_p4 = scmp.lt.u32.totalorder %s1998_s26, %s1994_s14  ;;  %p2002_p8 = scmp.lt.u32.totalorder %s1994_s14, %s2527_s2 }
 0x409   : > { %p1996_p1 = pnand %p1995_p0, %p2154_p5 }
 0x40a   : > { %p2001_p7 = por %p2000_p4, %p1999_p3 }
 0x40b   : > { %p1997_p2 = pneg %p1996_p1 }
 0x40c   : > { %p2003_p9 = por %p2002_p8, %p2001_p7 }
 0x40e   : > { %p2004_p10 = pnand %p2003_p9, %p1997_p2 }
 0x410   : > { %2007 = shalt.err (!%p2004_p10)
}
 0x411   : > { %1766 = dma.vmem_to_hbm [thread:$0]  (%p2154_p5), %s2531_s4, 2048, %s2527_s2, %s2536_s16, %s2050_s3, %s2050_s3, %s2051_s15  }
 0x412 PF: > { %p1780_p11 = scmp.ge.s32.totalorder %s2046_s20, 2  ;;  %s1438_s29 = sand.u32 1, %s2034_s17  }
 0x413   : > { %s1439_s1 = scalar_lea.sflag [#allocation3], %s1438_s29 }
 0x414   : > { %p1771_p12 = pnand %p1780_p11, %p2158_p6 }
 0x416   : > { %2025 = dma.done.wait (!%p1771_p12), %s1439_s1, 2048  }
 0x417   : > { %2027 = vsyncadd (!%p1771_p12), %s1439_s1, 4294965248  ;;  %s2637_s27 = sadd.s32 4294967294, %s2046_s20  }
 0x418   : > { %s1447_s30 = sand.u32 1, %s2637_s27  }
 0x419   : > { %s1448_s13 = scalar_lea.sflag [#allocation5], %s1447_s30 }
 0x41a   : > { %2029 = dma.done.wait (!%p1771_p12), %s1448_s13, 4096  }
 0x41b   : > { %2031 = vsyncadd (!%p1771_p12), %s1448_s13, 4294963200  ;;  %s2638_s4 = sld [smem:[#allocation9_spill]]  ;;  %p25_p5 = scmp.ge.s32.totalorder %s2139_s23, 4  }
 0x41c   : > { %s2639_s17 = smov %s2038_s18  ;;  %s2640_s18 = smov %s2042_s19 }
 0x41d   : > { %s2642_s20 = smov %s2139_s23  ;;  %27 = sbr.rel (!%p25_p5) target bundleno = 11 (0xb), region = 123 }
 0x421   : > { %s2641_s19 = smov %s2638_s4 }
 0x424   :  { %1462 = vsyncpa [#allocation3], 1 }
 0x425   :  { %1464 = vsyncpa [#allocation3 + $0x1], 1 }
 0x426   :  { %1465 = vsyncpa [#allocation5], 1 }
 0x427   :  { %1467 = vsyncpa [#allocation5 + $0x1], 1 }

// kernel: tpu_custom_call.1
= control target key start
LH: loop header
LB: loop body
LE: loop exit
PB: predicated region body
PF: predicated region fallthrough
CT: control target
= control target key end

     0   :  { %s2607_s0 = inlined_call_operand.vmem [shape: f32[256,64], index: 0, kind: input, shape index: {}]   ;;  %s2608_s1 = inlined_call_operand.vmem [shape: bf16[64,128], index: 1, kind: input, shape index: {}]   ;;  %s2609_s2 = inlined_call_operand.vmem [shape: f32[1,128], index: 2, kind: input, shape index: {}]   ;;  %s2610_s3 = inlined_call_operand.vmem [shape: bf16[128,128], index: 3, kind: input, shape index: {}]   ;;  %s2611_s4 = inlined_call_operand.vmem [shape: f32[1,128], index: 4, kind: input, shape index: {}]   ;;  %s2612_s5 = inlined_call_operand.vmem [shape: bf16[128,128], index: 5, kind: input, shape index: {}]   ;;  %s2613_s6 = inlined_call_operand.vmem [shape: f32[1,128], index: 6, kind: input, shape index: {}]   ;;  %s2614_s7 = inlined_call_operand.vmem [shape: bf16[128,256], index: 7, kind: input, shape index: {}]   ;;  %s2615_s8 = inlined_call_operand.vmem [shape: f32[1,256], index: 8, kind: input, shape index: {}]   ;;  %s2616_s9 = inlined_call_operand.hbm [shape: f32[256,128], index: 9, kind: output, shape index: {0}]   ;;  %s2617_s10 = inlined_call_operand.hbm [shape: f32[256,128], index: 10, kind: output, shape index: {1}]   ;;  %s2618_s11 = inlined_call_operand.hbm [shape: f32[256,128], index: 11, kind: output, shape index: {2}]  }
   0x1   :  { %2621 = sst [smem:[#allocation10_spill]] %s2607_s0 }
   0x2   :  { %2622 = sst [smem:[#allocation11_spill]] %s2608_s1 }
   0x3   :  { %2623 = sst [smem:[#allocation12_spill]] %s2609_s2 }
   0x4   :  { %2624 = sst [smem:[#allocation13_spill]] %s2610_s3 }
   0x5   :  { %2625 = sst [smem:[#allocation14_spill]] %s2611_s4 }
   0x6   :  { %17 = vsyncpa [#allocation3], 0 }
   0x7   :  { %19 = vsyncpa [#allocation3 + $0x1], 0 }
   0x8   :  { %20 = vsyncpa [#allocation5], 0 }
   0x9   :  { %22 = vsyncpa [#allocation5 + $0x1], 0  ;;  %s2114_s17 = smov 0   ;;  %s2116_s18 = smov 0  }
   0xa   :  { %s2118_s19 = smov 0   ;;  %s2120_s20 = smov 0  }
   0xb LB: > { %s2135_s21 = sadd.s32 4294967295, %s2046_s20   ;;  %s2619_s22 = sadd.s32 4294967294, %s2046_s20   ;;  %s2046_s20 = sphi %s2120_s20, %s2642_s20   ;;  %s2042_s19 = sphi %s2118_s19, %s2641_s19   ;;  %s2038_s18 = sphi %s2116_s18, %s2640_s18   ;;  %s2034_s17 = sphi %s2114_s17, %s2639_s17  }
   0xc   : > { %s2139_s23 = sadd.s32 1, %s2046_s20   ;;  %s229_s24 = sadd.s32 1, %s2042_s19 }
   0xd   : > { %s226_s25 = ssub.s32 %s2046_s20, %s2139_s23  ;;  %p239_p0 = scmp.ne.s32.totalorder %s2042_s19, %s2038_s18 }
   0xe   : > { %p227_p1 = scmp.eq.s32.totalorder %s226_s25, 0  ;;  %p240_p2 = scmp.eq.s32.totalorder %s2135_s21, 1 }
   0xf   : > { %p245_p3 = scmp.ne.s32.totalorder %s2038_s18, %s2034_s17  ;;  %p246_p4 = scmp.eq.s32.totalorder %s2619_s22, 1 }
  0x10   : > { %s2152_s26 = scalar_select %p227_p1, %s2042_s19, %s229_s24  }
  0x11   : > { %p2154_p5 = por %p240_p2, %p239_p0  ;;  %p2158_p6 = por %p246_p4, %p245_p3 }
  0x12   : > { %2626 = sst [smem:[#allocation9_spill]] %s2152_s26  ;;  %p1549_p7 = scmp.ge.s32.totalorder %s2046_s20, 1 }
  0x13   : > { %p349_p8 = scmp.lt.s32.totalorder %s2046_s20, 3 }
  0x15   : > { %p350_p9 = pnand %p1549_p7, %p349_p8 }
  0x16   : > { %s2629_s1 = sld [smem:[#allocation11_spill]] (!%p350_p9)  ;;  %s1553_s12 = sshll.u32 (!%p350_p9), %s2135_s21, 4  ;;  %vm472_vm0 = vcmask (!%p350_p9), 523264   ;;  %v1828_v36 = vld [vmem:[%s2612_s5] sm:$0xff] (!%p350_p9)   ;;  %v1829_v37 = vld [vmem:[%s2612_s5 + $0x8] sm:$0xff] (!%p350_p9)   ;;  %v1830_v38 = vld [vmem:[%s2612_s5 + $0x10] sm:$0xff] (!%p350_p9)  }
  0x17   : > { %353 = sbr.rel (%p350_p9) target bundleno = 1042 (0x412), region = 56  ;;  %p400_p10 = scmp.lt.s32.totalorder (!%p350_p9), %s1553_s12, 31  ;;  %v1831_v39 = vld [vmem:[%s2612_s5 + $0x18] sm:$0xff] (!%p350_p9)   ;;  %v1832_v40 = vld [vmem:[%s2612_s5 + $0x20] sm:$0xff] (!%p350_p9)   ;;  %v1833_v41 = vld [vmem:[%s2612_s5 + $0x28] sm:$0xff] (!%p350_p9)  }
  0x18   : > { %s2630_s3 = sld [smem:[#allocation13_spill]] (!%p350_p9)  ;;  %s2631_s0 = sld [smem:[#allocation10_spill]] (!%p350_p9) }
  0x19   : > { %s2632_s2 = sld [smem:[#allocation12_spill]] (!%p350_p9)  ;;  %s2620_s15 = sand.u32 (!%p350_p9), 1, %s2038_s18  }
  0x1a   : > { %s2633_s4 = sld [smem:[#allocation14_spill]] (!%p350_p9)  ;;  %s2325_s25 = sshll.u32 (!%p350_p9), %s2620_s15, 7 }
  0x1b   : > { %s2413_s22 = scalar_lea.vmem (!%p350_p9), [#allocation2], %s2325_s25 }
  0x1c   : > { %v1816_v0 = vld [vmem:[%s2629_s1] sm:$0xff] (!%p350_p9)   ;;  %v1817_v1 = vld [vmem:[%s2629_s1 + $0x8] sm:$0xff] (!%p350_p9)   ;;  %v1818_v2 = vld [vmem:[%s2629_s1 + $0x10] sm:$0xff] (!%p350_p9)   ;;  %s1391_s16 = sshll.u32 (!%p350_p9), %s2413_s22, 4  ;;  %s2477_s16 = int_to_ptr.vmem [resolvable:$true] %s1391_s16 }
  0x1d   : > { %1660 = vmatprep.subr.bf16.mxu0 (!%p350_p9), %v1816_v0  ;;  %v1819_v7 = vld [vmem:[%s2629_s1 + $0x18] sm:$0xff] (!%p350_p9)   ;;  %s1924_s24 = scalar_lea.vmem (!%p350_p9), %s2477_s16, 2048 }
  0x1e   : > { %1661 = vmatpush3.bf16.msra.mxu0 %v1816_v0  ;;  %s2644_s12 = smov (!%p400_p10, %s1553_s12), 31  ;;  %v1820_v3 = vld [vmem:[%s2630_s3] sm:$0xff]   ;;  %v1821_v4 = vld [vmem:[%s2630_s3 + $0x8] sm:$0xff]   ;;  %v1822_v9 = vld [vmem:[%s2630_s3 + $0x10] sm:$0xff]   ;;  %p1925_p11 = scmp.ne.s32.totalorder %s2477_s16, %s1924_s24 }
  0x1f   : > { %1662 = vmatprep.subr.bf16.mxu0 %v1817_v1  ;;  %s1554_s29 = sshll.u32 %s2644_s12, 3  ;;  %1684 = vmatprep.subr.bf16.mxu1 %v1820_v3  ;;  %v1823_v14 = vld [vmem:[%s2630_s3 + $0x18] sm:$0xff]   ;;  %v1824_v17 = vld [vmem:[%s2630_s3 + $0x20] sm:$0xff]   ;;  %v1825_v22 = vld [vmem:[%s2630_s3 + $0x28] sm:$0xff]   ;;  %s2423_s12 = scalar_lea.vmem [#allocation4], %s2325_s25 }
  0x20   : > { %s2183_s26 = scalar_lea.vmem %s2631_s0, %s1554_s29  ;;  %1685 = vmatpush3.bf16.msra.mxu1 %v1820_v3  ;;  %v1826_v34 = vld [vmem:[%s2630_s3 + $0x30] sm:$0xff]   ;;  %v1827_v35 = vld [vmem:[%s2630_s3 + $0x38] sm:$0xff]   ;;  %v1555_v42 = vld [vmem:[%s2632_s2] ss:$0 sm:$0xff]  ;;  %s1407_s14 = sshll.u32 %s2423_s12, 4  ;;  %s2521_s14 = int_to_ptr.vmem [resolvable:$true] %s1407_s14 }
  0x21   : > { %v409_v5 = vld [vmem:[%s2183_s26] sm:$0xff]  ;;  %v410_v6 = vld [vmem:[%s2183_s26 + $0x8] sm:$0xff]  ;;  %1686 = vmatprep.subr.bf16.mxu1 %v1821_v4  ;;  %v411_v10 = vld [vmem:[%s2183_s26 + $0x10] sm:$0xff]  ;;  %s2634_s0 = sand.u32 1, %s2038_s18   ;;  %p1926_p12 = pnand %p1925_p11, %p2154_p5 }
  0x22   : > { %1663 = vmatpush3.bf16.msra.mxu0 %v1817_v1  ;;  %v425_v8 = vpack.c.bf16 %v410_v6, %v409_v5  ;;  %v412_v11 = vld [vmem:[%s2183_s26 + $0x18] sm:$0xff]  ;;  %v413_v12 = vld [vmem:[%s2183_s26 + $0x20] sm:$0xff]  ;;  %v414_v13 = vld [vmem:[%s2183_s26 + $0x28] sm:$0xff]  ;;  %s2485_s1 = scalar_lea.sflag [#allocation3], %s2634_s0  ;;  %s2049_s29 = smov [#allocation2]  }
  0x23   : > { %1664 = vmatprep.subr.bf16.mxu0 %v1818_v2  ;;  %v426_v15 = vpack.c.bf16 %v412_v11, %v411_v10  ;;  %v427_v16 = vpack.c.bf16 %v414_v13, %v413_v12  ;;  %v415_v18 = vld [vmem:[%s2183_s26 + $0x30] sm:$0xff]  ;;  %v416_v19 = vld [vmem:[%s2183_s26 + $0x38] sm:$0xff]  ;;  %v417_v20 = vld [vmem:[%s2183_s26 + $0x40] sm:$0xff]  ;;  %p1927_p13 = pneg %p1926_p12  ;;  %s1928_s2 = sshll.u32 %s2049_s29, 4  ;;  %s1929_s2 = int_to_ptr.vmem [resolvable:$false] %s1928_s2 }
  0x24   : > { %1668 = vmatprep.mubr.msk.bf16.mxu0 %vm472_vm0, %v425_v8  ;;  %1687 = vmatpush3.bf16.msra.mxu1 %v1821_v4  ;;  %v418_v21 = vld [vmem:[%s2183_s26 + $0x48] sm:$0xff]  ;;  %v428_v23 = vpack.c.bf16 %v416_v19, %v415_v18  ;;  %v419_v25 = vld [vmem:[%s2183_s26 + $0x50] sm:$0xff]  ;;  %v420_v26 = vld [vmem:[%s2183_s26 + $0x58] sm:$0xff]  ;;  %s1930_s3 = scalar_lea.vmem %s1929_s2, 4096  ;;  %p1931_p0 = scmp.lt.s32.totalorder %s2477_s16, %s1929_s2 }
  0x25   : > { %1688 = vmatprep.subr.bf16.mxu1 %v1822_v9  ;;  %v429_v24 = vpack.c.bf16 %v418_v21, %v417_v20  ;;  %v421_v27 = vld [vmem:[%s2183_s26 + $0x60] sm:$0xff]  ;;  %v422_v28 = vld [vmem:[%s2183_s26 + $0x68] sm:$0xff]  ;;  %v430_v29 = vpack.c.bf16 %v420_v26, %v419_v25  ;;  %v423_v31 = vld [vmem:[%s2183_s26 + $0x70] sm:$0xff]  ;;  %p1932_p1 = scmp.lt.s32.totalorder %s1930_s3, %s1924_s24 }
  0x26   : > { %1665 = vmatpush3.bf16.msra.mxu0 %v1818_v2  ;;  %v431_v30 = vpack.c.bf16 %v422_v28, %v421_v27  ;;  %v424_v32 = vld [vmem:[%s2183_s26 + $0x78] sm:$0xff]  ;;  %s2332_s26 = scalar_lea.vmem [#allocation6], %s2325_s25  ;;  %s2466_s25 = sshll.u32 %s2135_s21, 11 }
  0x27   : > { %1666 = vmatprep.subr.bf16.mxu0 %v1819_v7  ;;  %v432_v33 = vpack.c.bf16 %v424_v32, %v423_v31  ;;  %s2475_s30 = scalar_lea.hbm %s2616_s9, %s2466_s25  ;;  %p1933_p2 = por %p1932_p1, %p1931_p0 }
  0x28   : > { %1689 = vmatpush3.bf16.msra.mxu1 %v1822_v9 }
  0x29   : > { %1690 = vmatprep.subr.bf16.mxu1 %v1823_v14  ;;  %p1934_p3 = pnand %p1933_p2, %p1927_p13 }
  0x2a   : > { %1667 = vmatpush3.bf16.msra.mxu0 %v1819_v7 }
  0x2b   : > { %1716 = vmatprep.subr.bf16.mxu0 %v1828_v36 }
  0x2c   : > { %1691 = vmatpush3.bf16.msra.mxu1 %v1823_v14 }
  0x2d   : > { %1669 = vmatmul.mubr.msk.bf16.vlgmr.msra.gmra.mrb[0].mxu0 %vm472_vm0, %v426_v15  ;;  %1692 = vmatprep.subr.bf16.mxu1 %v1824_v17 }
  0x2e   : > { %1672 = vmatprep.mubr.msk.bf16.mxu0 %vm472_vm0, %v427_v16  ;;  %1717 = vmatpush3.bf16.msra.mxu0 %v1828_v36  ;;  %v1835_v36 = vld [vmem:[%s2612_s5 + $0x38] sm:$0xff]  }
  0x2f   : > { %1718 = vmatprep.subr.bf16.mxu0 %v1829_v37 }
  0x30   : > { %1693 = vmatpush3.bf16.msra.mxu1 %v1824_v17 }
  0x31   : > { %1694 = vmatprep.subr.bf16.mxu1 %v1825_v22 }
  0x32   : > { %1719 = vmatpush3.bf16.msra.mxu0 %v1829_v37  ;;  %v1838_v37 = vld [vmem:[%s2614_s7 + $0x4] ss:$8 sps:$4 sm:$0xff]  }
  0x33   : > { %1720 = vmatprep.subr.bf16.mxu0 %v1830_v38 }
  0x34   : > { %1695 = vmatpush3.bf16.msra.mxu1 %v1825_v22 }
  0x35   : > { %1673 = vmatmul.mubr.msk.bf16.gmra.mrb[4].mxu0 %vm472_vm0, %v428_v23  ;;  %1696 = vmatprep.subr.bf16.mxu1 %v1826_v34 }
  0x36   : > { %1676 = vmatprep.mubr.msk.bf16.mxu0 %vm472_vm0, %v429_v24  ;;  %1721 = vmatpush3.bf16.msra.mxu0 %v1830_v38  ;;  %v1836_v38 = vld [vmem:[%s2614_s7] ss:$8 sps:$4 sm:$0xff]  }
  0x37   : > { %1722 = vmatprep.subr.bf16.mxu0 %v1831_v39 }
  0x38   : > { %1697 = vmatpush3.bf16.msra.mxu1 %v1826_v34 }
  0x39   : > { %1698 = vmatprep.subr.bf16.mxu1 %v1827_v35 }
  0x3a   : > { %1723 = vmatpush3.bf16.msra.mxu0 %v1831_v39  ;;  %v1841_v39 = vld [vmem:[%s2614_s7 + $0x14] ss:$8 sps:$4 sm:$0xff]  }
  0x3b   : > { %1724 = vmatprep.subr.bf16.mxu0 %v1832_v40 }
  0x3c   : > { %1699 = vmatpush3.bf16.msra.mxu1 %v1827_v35  ;;  %v1834_v35 = vld [vmem:[%s2612_s5 + $0x30] sm:$0xff]  }
  0x3d   : > { %1677 = vmatmul.mubr.msk.bf16.gmra.mrb[8].mxu0 %vm472_vm0, %v430_v29  ;;  %1748 = vmatprep.subr.bf16.mxu1 %v1838_v37 }
  0x3e   : > { %1680 = vmatprep.mubr.msk.bf16.mxu0 %vm472_vm0, %v431_v30  ;;  %1725 = vmatpush3.bf16.msra.mxu0 %v1832_v40  ;;  %v1839_v40 = vld [vmem:[%s2614_s7 + $0x10] ss:$8 sps:$4 sm:$0xff]  }
  0x3f   : > { %1726 = vmatprep.subr.bf16.mxu0 %v1833_v41 }
  0x42   : > { %1727 = vmatpush3.bf16.msra.mxu0 %v1833_v41  ;;  %v2272_v41 = vld [vmem:[%s2614_s7 + $0x24] ss:$8 sps:$4 sm:$0xff]  }
  0x43   : > { %1728 = vmatprep.subr.bf16.mxu0 %v1834_v35 }
  0x45   : > { %1681 = vmatmul.mubr.msk.bf16.gmra.mrb[12].mxu0 %vm472_vm0, %v432_v33 }
  0x46   : > { %1729 = vmatpush3.bf16.msra.mxu0 %v1834_v35 }
  0x47   : > { %1730 = vmatprep.subr.bf16.mxu0 %v1835_v36 }
  0x4a   : > { %1731 = vmatpush3.bf16.msra.mxu0 %v1835_v36 }
  0x4b   : > { %1126 = vmatprep.subr.bf16.mxu0 %v1838_v37 }
 0x100   : > { %v1670_v43 = vpop.f32.mrb[0].mxu0 }
 0x101   : > { %v540_v44 = vadd.f32 %v1670_v43, %v1555_v42  ;;  %v531_v45 = vpop.f32.mrb[1].mxu0  ;;  %v2283_v43 = vld [vmem:[%s2614_s7 + $0x34] ss:$8 sps:$4 sm:$0xff]  }
 0x102   : > { %v532_v46 = vadd.f32 %v1555_v42, %v531_v45  ;;  %v1671_v47 = vpop.f32.mrb[2].mxu0  ;;  %v2295_v45 = vld [vmem:[%s2614_s7 + $0x44] ss:$8 sps:$4 sm:$0xff]  }
 0x103   : > { %v543_v48 = vadd.f32 %v1671_v47, %v1555_v42  ;;  %v534_v49 = vpop.f32.mrb[3].mxu0  ;;  %v596_v51 = vmax.f32 %v540_v44, 0.0  ;;  %v2290_v44 = vld [vmem:[%s2614_s7 + $0x30] ss:$8 sps:$4 sm:$0xff]   ;;  %v2307_v47 = vld [vmem:[%s2614_s7 + $0x54] ss:$8 sps:$4 sm:$0xff]  }
 0x104   : > { %v535_v50 = vadd.f32 %v1555_v42, %v534_v49  ;;  %v594_v53 = vmax.f32 %v532_v46, 0.0  ;;  %v2302_v46 = vld [vmem:[%s2614_s7 + $0x40] ss:$8 sps:$4 sm:$0xff]  }
 0x105   : > { %v597_v52 = vmax.f32 %v543_v48, 0.0  ;;  %v2314_v48 = vld [vmem:[%s2614_s7 + $0x50] ss:$8 sps:$4 sm:$0xff]   ;;  %v2321_v49 = vld [vmem:[%s2633_s4] ss:$0 sm:$0xff] }
 0x106   : > { %v595_v54 = vmax.f32 %v535_v50, 0.0 }
 0x107   : > { %v611_v55 = vpack.c.bf16 %v597_v52, %v596_v51 }
 0x108   : > { %v1674_v56 = vpop.f32.mrb[4].mxu0  ;;  %v610_v57 = vpack.c.bf16 %v595_v54, %v594_v53 }
 0x109   : > { %v556_v58 = vadd.f32 %v1674_v56, %v1555_v42  ;;  %v547_v59 = vpop.f32.mrb[5].mxu0 }
 0x10a   : > { %v548_v60 = vadd.f32 %v1555_v42, %v547_v59  ;;  %v1675_v61 = vpop.f32.mrb[6].mxu0  ;;  %1700 = vmatprep.mubr.bf16.mxu1 %v610_v57 }
 0x10b   : > { %v559_v62 = vadd.f32 %v1675_v61, %v1555_v42  ;;  %v550_v63 = vpop.f32.mrb[7].mxu0  ;;  %1701 = vmatmul.mubr.bf16.vlgmr.msra.gmra.mrb[0].mxu1 %v611_v55  ;;  %v600_v1 = vmax.f32 %v556_v58, 0.0 }
 0x10c   : > { %v551_v0 = vadd.f32 %v1555_v42, %v550_v63  ;;  %v598_v3 = vmax.f32 %v548_v60, 0.0  ;;  %1756 = vmatpush1.bf16.msra.mxu1 %v1836_v38 }
 0x10d   : > { %v601_v2 = vmax.f32 %v559_v62, 0.0  ;;  %1749 = vmatprep.subr.bf16.mxu1 %v1841_v39 }
 0x10e   : > { %v599_v4 = vmax.f32 %v551_v0, 0.0 }
 0x10f   : > { %v613_v5 = vpack.c.bf16 %v601_v2, %v600_v1 }
 0x110   : > { %v612_v6 = vpack.c.bf16 %v599_v4, %v598_v3  ;;  %v1678_v7 = vpop.f32.mrb[8].mxu0  ;;  %1757 = vmatpush1.bf16.msra.mxu1 %v1839_v40 }
 0x111   : > { %v572_v8 = vadd.f32 %v1678_v7, %v1555_v42  ;;  %v563_v9 = vpop.f32.mrb[9].mxu0  ;;  %1750 = vmatprep.subr.bf16.mxu1 %v2272_v41 }
 0x112   : > { %v564_v10 = vadd.f32 %v1555_v42, %v563_v9  ;;  %v1679_v11 = vpop.f32.mrb[10].mxu0  ;;  %1704 = vmatprep.mubr.bf16.mxu1 %v612_v6 }
 0x113   : > { %v575_v12 = vadd.f32 %v1679_v11, %v1555_v42  ;;  %v566_v13 = vpop.f32.mrb[11].mxu0  ;;  %1705 = vmatmul.mubr.bf16.gmra.mrb[4].mxu1 %v613_v5  ;;  %v604_v15 = vmax.f32 %v572_v8, 0.0 }
 0x114   : > { %v567_v14 = vadd.f32 %v1555_v42, %v566_v13  ;;  %v602_v17 = vmax.f32 %v564_v10, 0.0 }
 0x115   : > { %v605_v16 = vmax.f32 %v575_v12, 0.0 }
 0x116   : > { %v603_v18 = vmax.f32 %v567_v14, 0.0 }
 0x117   : > { %v615_v19 = vpack.c.bf16 %v605_v16, %v604_v15 }
 0x118   : > { %v614_v20 = vpack.c.bf16 %v603_v18, %v602_v17  ;;  %v1682_v21 = vpop.f32.mrb[12].mxu0 }
 0x119   : > { %v588_v22 = vadd.f32 %v1682_v21, %v1555_v42  ;;  %v579_v23 = vpop.f32.mrb[13].mxu0 }
 0x11a   : > { %v580_v24 = vadd.f32 %v1555_v42, %v579_v23  ;;  %v1683_v25 = vpop.f32.mrb[14].mxu0  ;;  %1708 = vmatprep.mubr.bf16.mxu1 %v614_v20 }
 0x11b   : > { %v608_v26 = vmax.f32 %v588_v22, 0.0  ;;  %v591_v27 = vadd.f32 %v1683_v25, %v1555_v42  ;;  %v582_v28 = vpop.f32.mrb[15].mxu0  ;;  %1709 = vmatmul.mubr.bf16.gmra.mrb[8].mxu1 %v615_v19 }
 0x11c   : > { %v606_v29 = vmax.f32 %v580_v24, 0.0  ;;  %v583_v30 = vadd.f32 %v1555_v42, %v582_v28  ;;  %v2278_v42 = vld [vmem:[%s2614_s7 + $0x20] ss:$8 sps:$4 sm:$0xff]  }
 0x11d   : > { %v609_v31 = vmax.f32 %v591_v27, 0.0  ;;  %1758 = vmatpush1.bf16.msra.mxu1 %v2278_v42 }
 0x11e   : > { %v607_v32 = vmax.f32 %v583_v30, 0.0  ;;  %1751 = vmatprep.subr.bf16.mxu1 %v2283_v43 }
 0x11f   : > { %v617_v33 = vpack.c.bf16 %v609_v31, %v608_v26 }
 0x120   : > { %v616_v34 = vpack.c.bf16 %v607_v32, %v606_v29 }
 0x121   : > { %1759 = vmatpush1.bf16.msra.mxu1 %v2290_v44 }
 0x122   : > { %1712 = vmatprep.mubr.bf16.mxu1 %v616_v34  ;;  %1752 = vmatprep.subr.bf16.mxu1 %v2295_v45 }
 0x123   : > { %1713 = vmatmul.mubr.bf16.gmra.mrb[12].mxu1 %v617_v33 }
 0x125   : > { %1760 = vmatpush1.bf16.msra.mxu1 %v2302_v46 }
 0x126   : > { %1753 = vmatprep.subr.bf16.mxu1 %v2307_v47 }
 0x129   : > { %1761 = vmatpush1.bf16.msra.mxu1 %v2314_v48 }
 0x1de   : > { %v1702_v50 = vpop.f32.mrb[0].mxu1 }
 0x1df   : > { %v732_v51 = vadd.f32 %v1702_v50, %v2321_v49  ;;  %v723_v52 = vpop.f32.mrb[1].mxu1 }
 0x1e0   : > { %v724_v53 = vadd.f32 %v2321_v49, %v723_v52  ;;  %v1703_v54 = vpop.f32.mrb[2].mxu1 }
 0x1e1   : > { %v788_v55 = vmax.f32 %v732_v51, 0.0  ;;  %v735_v56 = vadd.f32 %v1703_v54, %v2321_v49  ;;  %v726_v57 = vpop.f32.mrb[3].mxu1 }
 0x1e2   : > { %v786_v58 = vmax.f32 %v724_v53, 0.0  ;;  %v727_v59 = vadd.f32 %v2321_v49, %v726_v57 }
 0x1e3   : > { %804 = vst [vmem:[%s2332_s26 + $0x10] sm:$0xff] %v788_v55  ;;  %v789_v60 = vmax.f32 %v735_v56, 0.0 }
 0x1e4   : > { %802 = vst [vmem:[%s2332_s26] sm:$0xff] %v786_v58  ;;  %v787_v61 = vmax.f32 %v727_v59, 0.0 }
 0x1e5   : > { %805 = vst [vmem:[%s2332_s26 + $0x18] sm:$0xff] %v789_v60  ;;  %v819_v62 = vpack.c.bf16 %v789_v60, %v788_v55 }
 0x1e6   : > { %803 = vst [vmem:[%s2332_s26 + $0x8] sm:$0xff] %v787_v61  ;;  %v818_v63 = vpack.c.bf16 %v787_v61, %v786_v58  ;;  %v1706_v0 = vpop.f32.mrb[4].mxu1 }
 0x1e7   : > { %v748_v1 = vadd.f32 %v1706_v0, %v2321_v49  ;;  %v739_v2 = vpop.f32.mrb[5].mxu1 }
 0x1e8   : > { %v740_v3 = vadd.f32 %v2321_v49, %v739_v2  ;;  %v1707_v4 = vpop.f32.mrb[6].mxu1  ;;  %1732 = vmatprep.mubr.bf16.mxu0 %v818_v63 }
 0x1e9   : > { %v792_v5 = vmax.f32 %v748_v1, 0.0  ;;  %v751_v6 = vadd.f32 %v1707_v4, %v2321_v49  ;;  %v742_v7 = vpop.f32.mrb[7].mxu1  ;;  %1733 = vmatmul.mubr.bf16.vlgmr.msra.gmra.mrb[16].mxu0 %v819_v62 }
 0x1ea   : > { %v790_v8 = vmax.f32 %v740_v3, 0.0  ;;  %v743_v9 = vadd.f32 %v2321_v49, %v742_v7  ;;  %1127 = vmatpush1.bf16.msra.mxu0 %v1836_v38 }
 0x1eb   : > { %808 = vst [vmem:[%s2332_s26 + $0x30] sm:$0xff] %v792_v5  ;;  %v793_v10 = vmax.f32 %v751_v6, 0.0  ;;  %1128 = vmatprep.subr.bf16.mxu0 %v1841_v39 }
 0x1ec   : > { %806 = vst [vmem:[%s2332_s26 + $0x20] sm:$0xff] %v790_v8  ;;  %v791_v11 = vmax.f32 %v743_v9, 0.0 }
 0x1ed   : > { %809 = vst [vmem:[%s2332_s26 + $0x38] sm:$0xff] %v793_v10  ;;  %v821_v12 = vpack.c.bf16 %v793_v10, %v792_v5 }
 0x1ee   : > { %807 = vst [vmem:[%s2332_s26 + $0x28] sm:$0xff] %v791_v11  ;;  %v820_v13 = vpack.c.bf16 %v791_v11, %v790_v8  ;;  %v1710_v14 = vpop.f32.mrb[8].mxu1  ;;  %1129 = vmatpush1.bf16.msra.mxu0 %v1839_v40 }
 0x1ef   : > { %v764_v15 = vadd.f32 %v1710_v14, %v2321_v49  ;;  %v755_v16 = vpop.f32.mrb[9].mxu1  ;;  %1130 = vmatprep.subr.bf16.mxu0 %v2272_v41 }
 0x1f0   : > { %v756_v17 = vadd.f32 %v2321_v49, %v755_v16  ;;  %v1711_v18 = vpop.f32.mrb[10].mxu1  ;;  %1736 = vmatprep.mubr.bf16.mxu0 %v820_v13 }
 0x1f1   : > { %v796_v19 = vmax.f32 %v764_v15, 0.0  ;;  %v767_v20 = vadd.f32 %v1711_v18, %v2321_v49  ;;  %v758_v21 = vpop.f32.mrb[11].mxu1  ;;  %1737 = vmatmul.mubr.bf16.gmra.mrb[20].mxu0 %v821_v12 }
 0x1f2   : > { %v794_v22 = vmax.f32 %v756_v17, 0.0  ;;  %v759_v23 = vadd.f32 %v2321_v49, %v758_v21  ;;  %1131 = vmatpush1.bf16.msra.mxu0 %v2278_v42  ;;  %v1856_v42 = vld [vmem:[%s2614_s7 + $0x64] ss:$8 sps:$4 sm:$0xff]  }
 0x1f3   : > { %812 = vst [vmem:[%s2332_s26 + $0x50] sm:$0xff] %v796_v19  ;;  %v797_v24 = vmax.f32 %v767_v20, 0.0  ;;  %1132 = vmatprep.subr.bf16.mxu0 %v2283_v43  ;;  %v1854_v43 = vld [vmem:[%s2614_s7 + $0x60] ss:$8 sps:$4 sm:$0xff]   ;;  %1754 = vmatprep.subr.bf16.mxu1 %v1856_v42 }
 0x1f4   : > { %810 = vst [vmem:[%s2332_s26 + $0x40] sm:$0xff] %v794_v22  ;;  %v795_v25 = vmax.f32 %v759_v23, 0.0  ;;  %1762 = vmatpush1.bf16.msra.mxu1 %v1854_v43 }
 0x1f5   : > { %813 = vst [vmem:[%s2332_s26 + $0x58] sm:$0xff] %v797_v24  ;;  %v823_v26 = vpack.c.bf16 %v797_v24, %v796_v19 }
 0x1f6   : > { %811 = vst [vmem:[%s2332_s26 + $0x48] sm:$0xff] %v795_v25  ;;  %v822_v27 = vpack.c.bf16 %v795_v25, %v794_v22  ;;  %v1714_v28 = vpop.f32.mrb[12].mxu1  ;;  %1133 = vmatpush1.bf16.msra.mxu0 %v2290_v44  ;;  %v1859_v44 = vld [vmem:[%s2614_s7 + $0x74] ss:$8 sps:$4 sm:$0xff]  }
 0x1f7   : > { %v780_v29 = vadd.f32 %v1714_v28, %v2321_v49  ;;  %v771_v30 = vpop.f32.mrb[13].mxu1  ;;  %1134 = vmatprep.subr.bf16.mxu0 %v2295_v45  ;;  %v1857_v45 = vld [vmem:[%s2614_s7 + $0x70] ss:$8 sps:$4 sm:$0xff]   ;;  %1755 = vmatprep.subr.bf16.mxu1 %v1859_v44 }
 0x1f8   : > { %v772_v31 = vadd.f32 %v2321_v49, %v771_v30  ;;  %v1715_v32 = vpop.f32.mrb[14].mxu1  ;;  %1740 = vmatprep.mubr.bf16.mxu0 %v822_v27  ;;  %1763 = vmatpush1.bf16.msra.mxu1 %v1857_v45 }
 0x1f9   : > { %v800_v33 = vmax.f32 %v780_v29, 0.0  ;;  %v783_v34 = vadd.f32 %v1715_v32, %v2321_v49  ;;  %v774_v35 = vpop.f32.mrb[15].mxu1  ;;  %1741 = vmatmul.mubr.bf16.gmra.mrb[24].mxu0 %v823_v26 }
 0x1fa   : > { %v798_v36 = vmax.f32 %v772_v31, 0.0  ;;  %v775_v37 = vadd.f32 %v2321_v49, %v774_v35  ;;  %1135 = vmatpush1.bf16.msra.mxu0 %v2302_v46  ;;  %v2048_v46 = vmov 0  }
 0x1fb   : > { %816 = vst [vmem:[%s2332_s26 + $0x70] sm:$0xff] %v800_v33  ;;  %v801_v38 = vmax.f32 %v783_v34, 0.0  ;;  %1136 = vmatprep.subr.bf16.mxu0 %v2307_v47  ;;  %1188 = vmatprep.mubr.bf16.mxu1 %v2048_v46  ;;  %v1577_v47 = vld [vmem:[%s2613_s6] ss:$0 sm:$0xff] }
 0x1fc   : > { %814 = vst [vmem:[%s2332_s26 + $0x60] sm:$0xff] %v798_v36  ;;  %v799_v39 = vmax.f32 %v775_v37, 0.0 }
 0x1fd   : > { %817 = vst [vmem:[%s2332_s26 + $0x78] sm:$0xff] %v801_v38  ;;  %v825_v40 = vpack.c.bf16 %v801_v38, %v800_v33 }
 0x1fe   : > { %815 = vst [vmem:[%s2332_s26 + $0x68] sm:$0xff] %v799_v39  ;;  %v824_v41 = vpack.c.bf16 %v799_v39, %v798_v36  ;;  %1137 = vmatpush1.bf16.msra.mxu0 %v2314_v48 }
 0x1ff   : > { %1138 = vmatprep.subr.bf16.mxu0 %v1856_v42 }
 0x200   : > { %1744 = vmatprep.mubr.bf16.mxu0 %v824_v41 }
 0x201   : > { %1745 = vmatmul.mubr.bf16.gmra.mrb[28].mxu0 %v825_v40  ;;  %v1036_v40 = vlaneseq }
 0x202   : > { %1139 = vmatpush1.bf16.msra.mxu0 %v1854_v43  ;;  %1158 = vmatprep.mubr.bf16.mxu0 %v2048_v46  ;;  %v1034_v43 = vld [vmem:[%s2615_s8] sm:$0x3] }
 0x203   : > { %1140 = vmatprep.subr.bf16.mxu0 %v1859_v44  ;;  %v1037_v41 = vshrl.u32 %v1036_v40, 7 }
 0x205   : > { %v1038_v42 = vsub.s32 0, %v1037_v41  ;;  %v1042_v44 = vsub.s32 1, %v1037_v41 }
 0x206   : > { %1141 = vmatpush1.bf16.msra.mxu0 %v1857_v45 }
 0x207   : > { %v2396_v45 = vrot.slane %v1034_v43, %v1038_v42 }
 0x2bc   : > { %v1734_v48 = vpop.f32.mrb[16].mxu0 }
 0x2bd   : > { %v940_v49 = vadd.f32 %v1734_v48, %v1577_v47  ;;  %v931_v50 = vpop.f32.mrb[17].mxu0 }
 0x2be   : > { %v932_v51 = vadd.f32 %v1577_v47, %v931_v50  ;;  %v1735_v52 = vpop.f32.mrb[18].mxu0 }
 0x2bf   : > { %v943_v53 = vadd.f32 %v1735_v52, %v1577_v47  ;;  %v934_v54 = vpop.f32.mrb[19].mxu0  ;;  %v996_v56 = vmax.f32 %v940_v49, 0.0 }
 0x2c0   : > { %v935_v55 = vadd.f32 %v1577_v47, %v934_v54  ;;  %v994_v58 = vmax.f32 %v932_v51, 0.0 }
 0x2c1   : > { %v997_v57 = vmax.f32 %v943_v53, 0.0 }
 0x2c2   : > { %v995_v59 = vmax.f32 %v935_v55, 0.0 }
 0x2c3   : > { %v1011_v60 = vpack.c.bf16 %v997_v57, %v996_v56 }
 0x2c4   : > { %v1010_v61 = vpack.c.bf16 %v995_v59, %v994_v58  ;;  %v1738_v62 = vpop.f32.mrb[20].mxu0 }
 0x2c5   : > { %v956_v63 = vadd.f32 %v1738_v62, %v1577_v47  ;;  %v947_v0 = vpop.f32.mrb[21].mxu0 }
 0x2c6   : > { %v948_v1 = vadd.f32 %v1577_v47, %v947_v0  ;;  %v1739_v2 = vpop.f32.mrb[22].mxu0  ;;  %1159 = vmatmul.mubr.bf16.vlgmr.msra.gmra.mrb[32].mxu0 %v1010_v61 }
 0x2c7   : > { %v959_v3 = vadd.f32 %v1739_v2, %v1577_v47  ;;  %v950_v4 = vpop.f32.mrb[23].mxu0  ;;  %1168 = vmatprep.mubr.bf16.mxu0 %v2048_v46  ;;  %v1000_v6 = vmax.f32 %v956_v63, 0.0 }
 0x2c8   : > { %v951_v5 = vadd.f32 %v1577_v47, %v950_v4  ;;  %v998_v8 = vmax.f32 %v948_v1, 0.0 }
 0x2c9   : > { %v1001_v7 = vmax.f32 %v959_v3, 0.0 }
 0x2ca   : > { %v999_v9 = vmax.f32 %v951_v5, 0.0 }
 0x2cb   : > { %v1013_v10 = vpack.c.bf16 %v1001_v7, %v1000_v6 }
 0x2cc   : > { %v1012_v11 = vpack.c.bf16 %v999_v9, %v998_v8  ;;  %v1742_v12 = vpop.f32.mrb[24].mxu0 }
 0x2cd   : > { %v972_v13 = vadd.f32 %v1742_v12, %v1577_v47  ;;  %v963_v14 = vpop.f32.mrb[25].mxu0  ;;  %1189 = vmatmul.mubr.bf16.vlgmr.msra.gmra.mrb[16].mxu1 %v1013_v10 }
 0x2ce   : > { %v964_v15 = vadd.f32 %v1577_v47, %v963_v14  ;;  %v1743_v16 = vpop.f32.mrb[26].mxu0  ;;  %1169 = vmatmul.mubr.bf16.gmra.mrb[36].mxu0 %v1011_v60  ;;  %1198 = vmatprep.mubr.bf16.mxu1 %v2048_v46 }
 0x2cf   : > { %v975_v17 = vadd.f32 %v1743_v16, %v1577_v47  ;;  %v966_v18 = vpop.f32.mrb[27].mxu0  ;;  %1178 = vmatprep.mubr.bf16.mxu0 %v2048_v46  ;;  %v1004_v20 = vmax.f32 %v972_v13, 0.0 }
 0x2d0   : > { %v967_v19 = vadd.f32 %v1577_v47, %v966_v18  ;;  %v1002_v22 = vmax.f32 %v964_v15, 0.0 }
 0x2d1   : > { %v1005_v21 = vmax.f32 %v975_v17, 0.0 }
 0x2d2   : > { %v1003_v23 = vmax.f32 %v967_v19, 0.0 }
 0x2d3   : > { %v1015_v24 = vpack.c.bf16 %v1005_v21, %v1004_v20 }
 0x2d4   : > { %v1014_v25 = vpack.c.bf16 %v1003_v23, %v1002_v22  ;;  %v1746_v26 = vpop.f32.mrb[28].mxu0 }
 0x2d5   : > { %v988_v27 = vadd.f32 %v1746_v26, %v1577_v47  ;;  %v979_v28 = vpop.f32.mrb[29].mxu0 }
 0x2d6   : > { %v980_v29 = vadd.f32 %v1577_v47, %v979_v28  ;;  %v1747_v30 = vpop.f32.mrb[30].mxu0  ;;  %1179 = vmatmul.mubr.bf16.gmra.mrb[40].mxu0 %v1012_v11  ;;  %1199 = vmatmul.mubr.bf16.gmra.mrb[20].mxu1 %v1014_v25 }
 0x2d7   : > { %v991_v31 = vadd.f32 %v1747_v30, %v1577_v47  ;;  %v982_v32 = vpop.f32.mrb[31].mxu0  ;;  %1208 = vmatprep.mubr.bf16.mxu1 %v2048_v46  ;;  %v1008_v34 = vmax.f32 %v988_v27, 0.0 }
 0x2d8   : > { %v983_v33 = vadd.f32 %v1577_v47, %v982_v32  ;;  %v1006_v36 = vmax.f32 %v980_v29, 0.0  ;;  %v2398_v47 = vrot.slane %v1034_v43, %v1042_v44 }
 0x2d9   : > { %v1009_v35 = vmax.f32 %v991_v31, 0.0 }
 0x2da   : > { %v1007_v37 = vmax.f32 %v983_v33, 0.0 }
 0x2db   : > { %v1017_v38 = vpack.c.bf16 %v1009_v35, %v1008_v34 }
 0x2dc   : > { %v1016_v39 = vpack.c.bf16 %v1007_v37, %v1006_v36 }
 0x2de   : > { %1209 = vmatmul.mubr.bf16.gmra.mrb[24].mxu1 %v1015_v24 }
 0x2df   : > { %1218 = vmatprep.mubr.bf16.mxu1 %v2048_v46 }
 0x2e6   : > { %1219 = vmatmul.mubr.bf16.gmra.mrb[28].mxu1 %v1016_v39 }
 0x2e7   : > { %1228 = vmatprep.mubr.bf16.mxu1 %v2048_v46 }
 0x2ee   : > { %1229 = vmatmul.mubr.bf16.gmra.mrb[32].mxu1 %v1017_v38 }
 0x399   : > { %v1160_v48 = vpop.f32.mrb[32].mxu0 }
 0x39a   : > { %v1161_v49 = vadd.f32 %v1160_v48, %v2396_v45  ;;  %v1162_v50 = vpop.f32.mrb[33].mxu0 }
 0x39b   : > { %v1163_v51 = vadd.f32 %v1162_v50, %v2398_v47  ;;  %v1164_v46 = vpop.f32.mrb[34].mxu0 }
 0x39c   : > { %v1239_v52 = vmul.f32 1.442695, %v1161_v49  ;;  %v1165_v53 = vadd.f32 %v1164_v46, %v2396_v45  ;;  %v1166_v54 = vpop.f32.mrb[35].mxu0 }
 0x39d   : > { %v1287_v55 = vmul.f32 0.5, %v1163_v51  ;;  %v1167_v56 = vadd.f32 %v1166_v54, %v2398_v47 }
 0x39e   : > { %1860 = vpow2.f32 %v1239_v52  ;;  %v1241_v57 = vmul.f32 1.442695, %v1165_v53 }
 0x39f   : > { %1862 = vtanh.f32 %v1287_v55  ;;  %v1288_v58 = vmul.f32 0.5, %v1167_v56 }
 0x3a0   : > { %1864 = vpow2.f32 %v1241_v57  ;;  %v1190_v59 = vpop.f32.mrb[16].mxu1 }
 0x3a1   : > { %1866 = vtanh.f32 %v1288_v58  ;;  %v1191_v60 = vadd.f32 %v1190_v59, %v2396_v45  ;;  %v1170_v61 = vpop.f32.mrb[36].mxu0  ;;  %v1192_v62 = vpop.f32.mrb[17].mxu1 }
 0x3a2   : > { %v1171_v63 = vadd.f32 %v1170_v61, %v2396_v45  ;;  %v1193_v0 = vadd.f32 %v1192_v62, %v2398_v47  ;;  %v1172_v1 = vpop.f32.mrb[37].mxu0  ;;  %v1194_v2 = vpop.f32.mrb[18].mxu1 }
 0x3a3   : > { %v1251_v3 = vmul.f32 1.442695, %v1191_v60  ;;  %v1173_v4 = vadd.f32 %v1172_v1, %v2398_v47  ;;  %v1195_v5 = vadd.f32 %v1194_v2, %v2396_v45  ;;  %v1174_v6 = vpop.f32.mrb[38].mxu0  ;;  %v1196_v7 = vpop.f32.mrb[19].mxu1 }
 0x3a4   : > { %v1243_v8 = vmul.f32 1.442695, %v1171_v63  ;;  %v1293_v9 = vmul.f32 0.5, %v1193_v0  ;;  %v1175_v10 = vadd.f32 %v1174_v6, %v2396_v45  ;;  %v1197_v11 = vadd.f32 %v1196_v7, %v2398_v47  ;;  %v1176_v12 = vpop.f32.mrb[39].mxu0 }
 0x3a5   : > { %1868 = vpow2.f32 %v1251_v3  ;;  %v1289_v13 = vmul.f32 0.5, %v1173_v4  ;;  %v1253_v14 = vmul.f32 1.442695, %v1195_v5  ;;  %v1177_v15 = vadd.f32 %v1176_v12, %v2398_v47 }
 0x3a6   : > { %1870 = vpow2.f32 %v1243_v8  ;;  %v1245_v16 = vmul.f32 1.442695, %v1175_v10  ;;  %v1294_v17 = vmul.f32 0.5, %v1197_v11 }
 0x3a7   : > { %1872 = vtanh.f32 %v1293_v9  ;;  %v1290_v19 = vmul.f32 0.5, %v1177_v15 }
 0x3a8   : > { %v1861_v18 = vpop.eup %1860  ;;  %1874 = vtanh.f32 %v1289_v13 }
 0x3a9   : > { %v1863_v20 = vpop.eup %1862  ;;  %1271 = vst [vmem:[%s2413_s22] sm:$0xff] %v1861_v18  ;;  %1876 = vpow2.f32 %v1253_v14  ;;  %v1180_v21 = vpop.f32.mrb[40].mxu0 }
 0x3aa   : > { %v1200_v22 = vpop.f32.mrb[20].mxu1  ;;  %v1865_v23 = vpop.eup %1864  ;;  %v1319_v24 = vadd.f32 1.0, %v1863_v20  ;;  %1878 = vpow2.f32 %v1245_v16  ;;  %v1181_v25 = vadd.f32 %v1180_v21, %v2396_v45 }
 0x3ab   : > { %v1201_v26 = vadd.f32 %v1200_v22, %v2396_v45  ;;  %v1182_v27 = vpop.f32.mrb[41].mxu0  ;;  %v1202_v28 = vpop.f32.mrb[21].mxu1  ;;  %1272 = vst [vmem:[%s2413_s22 + $0x8] sm:$0xff] %v1865_v23  ;;  %1880 = vtanh.f32 %v1294_v17 }
 0x3ac   : > { %v1867_v29 = vpop.eup %1866  ;;  %v1183_v30 = vadd.f32 %v1182_v27, %v2398_v47  ;;  %v1203_v31 = vadd.f32 %v1202_v28, %v2398_v47  ;;  %v1184_v32 = vpop.f32.mrb[42].mxu0  ;;  %v1335_v34 = vmul.f32 0.5, %v1319_v24  ;;  %1882 = vtanh.f32 %v1290_v19 }
 0x3ad   : > { %v1204_v33 = vpop.f32.mrb[22].mxu1  ;;  %v1320_v35 = vadd.f32 1.0, %v1867_v29  ;;  %v1247_v36 = vmul.f32 1.442695, %v1181_v25  ;;  %v1186_v37 = vpop.f32.mrb[43].mxu0  ;;  %v1185_v42 = vadd.f32 %v1184_v32, %v2396_v45 }
 0x3ae   : > { %v1206_v38 = vpop.f32.mrb[23].mxu1  ;;  %v1255_v39 = vmul.f32 1.442695, %v1201_v26  ;;  %v1291_v40 = vmul.f32 0.5, %v1183_v30  ;;  %v1295_v41 = vmul.f32 0.5, %v1203_v31  ;;  %1351 = vst [vmem:[%s2423_s12] sm:$0xff] %v1335_v34  ;;  %v1205_v44 = vadd.f32 %v1204_v33, %v2396_v45 }
 0x3af   : > { %v1336_v43 = vmul.f32 0.5, %v1320_v35  ;;  %1884 = vpow2.f32 %v1247_v36  ;;  %v1187_v48 = vadd.f32 %v1186_v37, %v2398_v47  ;;  %v1869_v49 = vpop.eup %1868  ;;  %v1249_v50 = vmul.f32 1.442695, %v1185_v42 }
 0x3b0   : > { %1886 = vpow2.f32 %v1255_v39  ;;  %v1207_v51 = vadd.f32 %v1206_v38, %v2398_v47  ;;  %v1871_v46 = vpop.eup %1870  ;;  %1277 = vst [vmem:[%s2413_s22 + $0x30] sm:$0xff] %v1869_v49  ;;  %v1257_v52 = vmul.f32 1.442695, %v1205_v44 }
 0x3b1   : > { %1352 = vst [vmem:[%s2423_s12 + $0x8] sm:$0xff] %v1336_v43  ;;  %1888 = vtanh.f32 %v1291_v40  ;;  %v1292_v53 = vmul.f32 0.5, %v1187_v48  ;;  %v1873_v54 = vpop.eup %1872  ;;  %1273 = vst [vmem:[%s2413_s22 + $0x10] sm:$0xff] %v1871_v46  ;;  %v1210_v56 = vpop.f32.mrb[24].mxu1 }
 0x3b2   : > { %1890 = vtanh.f32 %v1295_v41  ;;  %v1296_v55 = vmul.f32 0.5, %v1207_v51  ;;  %v1875_v57 = vpop.eup %1874  ;;  %v1325_v58 = vadd.f32 1.0, %v1873_v54  ;;  %v1211_v59 = vadd.f32 %v1210_v56, %v2396_v45  ;;  %v1212_v60 = vpop.f32.mrb[25].mxu1 }
 0x3b3   : > { %1892 = vpow2.f32 %v1249_v50  ;;  %v1877_v61 = vpop.eup %1876  ;;  %v1321_v62 = vadd.f32 1.0, %v1875_v57  ;;  %v1213_v63 = vadd.f32 %v1212_v60, %v2398_v47  ;;  %v1214_v0 = vpop.f32.mrb[26].mxu1 }
 0x3b4   : > { %1894 = vpow2.f32 %v1257_v52  ;;  %v1879_v1 = vpop.eup %1878  ;;  %v1341_v2 = vmul.f32 0.5, %v1325_v58  ;;  %1278 = vst [vmem:[%s2413_s22 + $0x38] sm:$0xff] %v1877_v61  ;;  %v1259_v3 = vmul.f32 1.442695, %v1211_v59  ;;  %v1215_v4 = vadd.f32 %v1214_v0, %v2396_v45  ;;  %v1216_v5 = vpop.f32.mrb[27].mxu1 }
 0x3b5   : > { %1896 = vtanh.f32 %v1292_v53  ;;  %v1881_v6 = vpop.eup %1880  ;;  %v1337_v7 = vmul.f32 0.5, %v1321_v62  ;;  %1274 = vst [vmem:[%s2413_s22 + $0x18] sm:$0xff] %v1879_v1  ;;  %v1297_v8 = vmul.f32 0.5, %v1213_v63  ;;  %v1217_v9 = vadd.f32 %v1216_v5, %v2398_v47 }
 0x3b6   : > { %1898 = vtanh.f32 %v1296_v55  ;;  %v1883_v10 = vpop.eup %1882  ;;  %1357 = vst [vmem:[%s2423_s12 + $0x30] sm:$0xff] %v1341_v2  ;;  %v1326_v11 = vadd.f32 1.0, %v1881_v6  ;;  %v1261_v12 = vmul.f32 1.442695, %v1215_v4 }
 0x3b7   : > { %1900 = vpow2.f32 %v1259_v3  ;;  %1353 = vst [vmem:[%s2423_s12 + $0x10] sm:$0xff] %v1337_v7  ;;  %v1322_v13 = vadd.f32 1.0, %v1883_v10  ;;  %v1298_v14 = vmul.f32 0.5, %v1217_v9 }
 0x3b8   : > { %1902 = vtanh.f32 %v1297_v8  ;;  %v1342_v16 = vmul.f32 0.5, %v1326_v11 }
 0x3b9   : > { %v1885_v15 = vpop.eup %1884  ;;  %1904 = vpow2.f32 %v1261_v12  ;;  %v1338_v18 = vmul.f32 0.5, %v1322_v13  ;;  %v1220_v19 = vpop.f32.mrb[28].mxu1 }
 0x3ba   : > { %v1887_v17 = vpop.eup %1886  ;;  %1275 = vst [vmem:[%s2413_s22 + $0x20] sm:$0xff] %v1885_v15  ;;  %1906 = vtanh.f32 %v1298_v14  ;;  %1358 = vst [vmem:[%s2423_s12 + $0x38] sm:$0xff] %v1342_v16  ;;  %v1221_v21 = vadd.f32 %v1220_v19, %v2396_v45  ;;  %v1222_v22 = vpop.f32.mrb[29].mxu1 }
 0x3bb   : > { %v1889_v20 = vpop.eup %1888  ;;  %1279 = vst [vmem:[%s2413_s22 + $0x40] sm:$0xff] %v1887_v17  ;;  %1354 = vst [vmem:[%s2423_s12 + $0x18] sm:$0xff] %v1338_v18  ;;  %v1223_v25 = vadd.f32 %v1222_v22, %v2398_v47  ;;  %v1224_v26 = vpop.f32.mrb[30].mxu1 }
 0x3bc   : > { %v1891_v23 = vpop.eup %1890  ;;  %v1323_v24 = vadd.f32 1.0, %v1889_v20  ;;  %v1263_v29 = vmul.f32 1.442695, %v1221_v21  ;;  %v1225_v30 = vadd.f32 %v1224_v26, %v2396_v45  ;;  %v1226_v31 = vpop.f32.mrb[31].mxu1 }
 0x3bd   : > { %v1893_v27 = vpop.eup %1892  ;;  %v1327_v28 = vadd.f32 1.0, %v1891_v23  ;;  %v1299_v34 = vmul.f32 0.5, %v1223_v25  ;;  %v1227_v35 = vadd.f32 %v1226_v31, %v2398_v47 }
 0x3be   : > { %v1895_v32 = vpop.eup %1894  ;;  %v1339_v33 = vmul.f32 0.5, %v1323_v24  ;;  %1276 = vst [vmem:[%s2413_s22 + $0x28] sm:$0xff] %v1893_v27  ;;  %1908 = vpow2.f32 %v1263_v29  ;;  %v1265_v38 = vmul.f32 1.442695, %v1225_v30 }
 0x3bf   : > { %v1897_v36 = vpop.eup %1896  ;;  %v1343_v37 = vmul.f32 0.5, %v1327_v28  ;;  %1280 = vst [vmem:[%s2413_s22 + $0x48] sm:$0xff] %v1895_v32  ;;  %1910 = vtanh.f32 %v1299_v34  ;;  %v1300_v41 = vmul.f32 0.5, %v1227_v35 }
 0x3c0   : > { %v1899_v39 = vpop.eup %1898  ;;  %1355 = vst [vmem:[%s2423_s12 + $0x20] sm:$0xff] %v1339_v33  ;;  %v1324_v40 = vadd.f32 1.0, %v1897_v36  ;;  %1912 = vpow2.f32 %v1265_v38 }
 0x3c1   : > { %v1901_v42 = vpop.eup %1900  ;;  %1359 = vst [vmem:[%s2423_s12 + $0x40] sm:$0xff] %v1343_v37  ;;  %v1328_v43 = vadd.f32 1.0, %v1899_v39  ;;  %1914 = vtanh.f32 %v1300_v41  ;;  %v1230_v49 = vpop.f32.mrb[32].mxu1 }
 0x3c2   : > { %v1903_v44 = vpop.eup %1902  ;;  %v1340_v48 = vmul.f32 0.5, %v1324_v40  ;;  %1281 = vst [vmem:[%s2413_s22 + $0x50] sm:$0xff] %v1901_v42  ;;  %v1231_v52 = vadd.f32 %v1230_v49, %v2396_v45  ;;  %v1232_v53 = vpop.f32.mrb[33].mxu1 }
 0x3c3   : > { %v1905_v50 = vpop.eup %1904  ;;  %v1344_v51 = vmul.f32 0.5, %v1328_v43  ;;  %v1329_v46 = vadd.f32 1.0, %v1903_v44  ;;  %v1233_v55 = vadd.f32 %v1232_v53, %v2398_v47  ;;  %v1234_v56 = vpop.f32.mrb[34].mxu1 }
 0x3c4   : > { %v1907_v54 = vpop.eup %1906  ;;  %1356 = vst [vmem:[%s2423_s12 + $0x28] sm:$0xff] %v1340_v48  ;;  %1282 = vst [vmem:[%s2413_s22 + $0x58] sm:$0xff] %v1905_v50  ;;  %v1267_v59 = vmul.f32 1.442695, %v1231_v52  ;;  %v1235_v60 = vadd.f32 %v1234_v56, %v2396_v45  ;;  %v1236_v61 = vpop.f32.mrb[35].mxu1 }
 0x3c5   : > { %1360 = vst [vmem:[%s2423_s12 + $0x48] sm:$0xff] %v1344_v51  ;;  %v1345_v57 = vmul.f32 0.5, %v1329_v46  ;;  %v1330_v58 = vadd.f32 1.0, %v1907_v54  ;;  %v1301_v62 = vmul.f32 0.5, %v1233_v55  ;;  %v1237_v63 = vadd.f32 %v1236_v61, %v2398_v47 }
 0x3c6   : > { %1916 = vpow2.f32 %v1267_v59  ;;  %v1269_v1 = vmul.f32 1.442695, %v1235_v60 }
 0x3c7   : > { %1361 = vst [vmem:[%s2423_s12 + $0x50] sm:$0xff] %v1345_v57  ;;  %v1346_v0 = vmul.f32 0.5, %v1330_v58  ;;  %1918 = vtanh.f32 %v1301_v62  ;;  %v1302_v2 = vmul.f32 0.5, %v1237_v63 }
 0x3c8   : > { %v1909_v3 = vpop.eup %1908  ;;  %1920 = vpow2.f32 %v1269_v1 }
 0x3c9   : > { %1362 = vst [vmem:[%s2423_s12 + $0x58] sm:$0xff] %v1346_v0  ;;  %v1911_v4 = vpop.eup %1910  ;;  %1283 = vst [vmem:[%s2413_s22 + $0x60] sm:$0xff] %v1909_v3  ;;  %1922 = vtanh.f32 %v1302_v2 }
 0x3ca   : > { %v1913_v45 = vpop.eup %1912  ;;  %v1331_v47 = vadd.f32 1.0, %v1911_v4 }
 0x3cb   : > { %v1915_v5 = vpop.eup %1914  ;;  %1284 = vst [vmem:[%s2413_s22 + $0x68] sm:$0xff] %v1913_v45 }
 0x3cc   : > { %v1347_v6 = vmul.f32 0.5, %v1331_v47  ;;  %v1332_v7 = vadd.f32 1.0, %v1915_v5 }
 0x3ce   : > { %1363 = vst [vmem:[%s2423_s12 + $0x60] sm:$0xff] %v1347_v6  ;;  %v1348_v8 = vmul.f32 0.5, %v1332_v7 }
 0x3d0   : > { %v1917_v9 = vpop.eup %1916  ;;  %1364 = vst [vmem:[%s2423_s12 + $0x68] sm:$0xff] %v1348_v8 }
 0x3d1   : > { %v1919_v10 = vpop.eup %1918  ;;  %1285 = vst [vmem:[%s2413_s22 + $0x70] sm:$0xff] %v1917_v9 }
 0x3d2   : > { %v1921_v11 = vpop.eup %1920  ;;  %v1333_v12 = vadd.f32 1.0, %v1919_v10 }
 0x3d3   : > { %v1923_v13 = vpop.eup %1922  ;;  %1286 = vst [vmem:[%s2413_s22 + $0x78] sm:$0xff] %v1921_v11 }
 0x3d4   : > { %v1349_v14 = vmul.f32 0.5, %v1333_v12  ;;  %v1334_v15 = vadd.f32 1.0, %v1923_v13 }
 0x3d5   : > { %1937 = shalt.err (!%p1934_p3)
}
 0x3d6   : > { %s1938_s0 = scalar_lea.hbm %s2475_s30, 2048  ;;  %s1942_s29 = scalar_lea.hbm %s2616_s9, 4096 }
 0x3d7   : > { %p1939_p4 = scmp.ne.s32.totalorder %s2475_s30, %s1938_s0  ;;  %p1943_p9 = scmp.lt.u32.totalorder %s2475_s30, %s2616_s9 }
 0x3d8   : > { %p1944_p10 = scmp.lt.u32.totalorder %s1942_s29, %s1938_s0  ;;  %p1946_p12 = scmp.lt.u32.totalorder %s1938_s0, %s2475_s30 }
 0x3d9   : > { %p1940_p7 = pnand %p1939_p4, %p2154_p5 }
 0x3da   : > { %p1945_p11 = por %p1944_p10, %p1943_p9 }
 0x3db   : > { %p1941_p8 = pneg %p1940_p7 }
 0x3dc   : > { %p1947_p13 = por %p1946_p12, %p1945_p11 }
 0x3de   : > { %p1948_p0 = pnand %p1947_p13, %p1941_p8 }
 0x3e0   : > { %1951 = shalt.err (!%p1948_p0)
}
 0x3e1   : > { %s2050_s3 = smov 128   ;;  %s2051_s15 = smov 8   ;;  %1365 = vst [vmem:[%s2423_s12 + $0x70] sm:$0xff] %v1349_v14  ;;  %v1350_v16 = vmul.f32 0.5, %v1334_v15 }
 0x3e2   : > { %1764 = dma.vmem_to_hbm [thread:$0]  (%p2154_p5), %s2477_s16, 2048, %s2475_s30, %s2485_s1, %s2050_s3, %s2050_s3, %s2051_s15  }
 0x3e3   : > { %s2517_s0 = scalar_lea.hbm %s2617_s10, %s2466_s25  ;;  %s2527_s2 = scalar_lea.hbm %s2618_s11, %s2466_s25  ;;  %1366 = vst [vmem:[%s2423_s12 + $0x78] sm:$0xff] %v1350_v16 }
 0x3e4   : > { %s2635_s4 = sshll.u32 %s2332_s26, 4  ;;  %s2636_s1 = sand.u32 1, %s2135_s21   ;;  %s2531_s4 = int_to_ptr.vmem [resolvable:$true] %s2635_s4 }
 0x3e5   : > { %s2536_s16 = scalar_lea.sflag [#allocation5], %s2636_s1  ;;  %s1952_s30 = scalar_lea.vmem %s2521_s14, 2048 }
 0x3e6   : > { %p1953_p1 = scmp.ne.s32.totalorder %s2521_s14, %s1952_s30  ;;  %s2052_s13 = smov [#allocation4]  }
 0x3e7   : > { %s1956_s24 = sshll.u32 %s2052_s13, 4  ;;  %s1957_s24 = int_to_ptr.vmem [resolvable:$false] %s1956_s24 }
 0x3e8   : > { %p1954_p2 = pnand %p1953_p1, %p2154_p5  ;;  %s1958_s22 = scalar_lea.vmem %s1957_s24, 4096 }
 0x3e9   : > { %p1959_p4 = scmp.lt.s32.totalorder %s2521_s14, %s1957_s24  ;;  %p1960_p7 = scmp.lt.s32.totalorder %s1958_s22, %s1952_s30 }
 0x3ea   : > { %p1955_p3 = pneg %p1954_p2 }
 0x3eb   : > { %p1961_p8 = por %p1960_p7, %p1959_p4 }
 0x3ed   : > { %p1962_p9 = pnand %p1961_p8, %p1955_p3 }
 0x3ef   : > { %1965 = shalt.err (!%p1962_p9)
}
 0x3f0   : > { %s1966_s21 = scalar_lea.hbm %s2517_s0, 2048  ;;  %s1970_s25 = scalar_lea.hbm %s2617_s10, 4096 }
 0x3f1   : > { %p1967_p10 = scmp.ne.s32.totalorder %s2517_s0, %s1966_s21  ;;  %p1971_p13 = scmp.lt.u32.totalorder %s2517_s0, %s2617_s10 }
 0x3f2   : > { %p1972_p0 = scmp.lt.u32.totalorder %s1970_s25, %s1966_s21  ;;  %p1974_p2 = scmp.lt.u32.totalorder %s1966_s21, %s2517_s0 }
 0x3f3   : > { %p1968_p11 = pnand %p1967_p10, %p2154_p5 }
 0x3f4   : > { %p1973_p1 = por %p1972_p0, %p1971_p13 }
 0x3f5   : > { %p1969_p12 = pneg %p1968_p11 }
 0x3f6   : > { %p1975_p3 = por %p1974_p2, %p1973_p1 }
 0x3f8   : > { %p1976_p4 = pnand %p1975_p3, %p1969_p12 }
 0x3fa   : > { %1979 = shalt.err (!%p1976_p4)
}
 0x3fb   : > { %1765 = dma.vmem_to_hbm [thread:$0]  (%p2154_p5), %s2521_s14, 2048, %s2517_s0, %s2536_s16, %s2050_s3, %s2050_s3, %s2051_s15  }
 0x3fc   : > { %s1980_s30 = scalar_lea.vmem %s2531_s4, 2048  ;;  %s2053_s13 = smov [#allocation6]  }
 0x3fd   : > { %p1981_p7 = scmp.ne.s32.totalorder %s2531_s4, %s1980_s30  ;;  %s1984_s24 = sshll.u32 %s2053_s13, 4  ;;  %s1985_s24 = int_to_ptr.vmem [resolvable:$false] %s1984_s24 }
 0x3fe   : > { %s1986_s22 = scalar_lea.vmem %s1985_s24, 4096  ;;  %p1987_p10 = scmp.lt.s32.totalorder %s2531_s4, %s1985_s24 }
 0x3ff   : > { %p1982_p8 = pnand %p1981_p7, %p2154_p5  ;;  %p1988_p11 = scmp.lt.s32.totalorder %s1986_s22, %s1980_s30 }
 0x401   : > { %p1983_p9 = pneg %p1982_p8  ;;  %p1989_p12 = por %p1988_p11, %p1987_p10 }
 0x403   : > { %p1990_p13 = pnand %p1989_p12, %p1983_p9 }
 0x405   : > { %1993 = shalt.err (!%p1990_p13)
}
 0x406   : > { %s1994_s14 = scalar_lea.hbm %s2527_s2, 2048  ;;  %s1998_s26 = scalar_lea.hbm %s2618_s11, 4096 }
 0x407   : > { %p1995_p0 = scmp.ne.s32.totalorder %s2527_s2, %s1994_s14  ;;  %p1999_p3 = scmp.lt.u32.totalorder %s2527_s2, %s2618_s11 }
 0x408   : > { %p2000_p4 = scmp.lt.u32.totalorder %s1998_s26, %s1994_s14  ;;  %p2002_p8 = scmp.lt.u32.totalorder %s1994_s14, %s2527_s2 }
 0x409   : > { %p1996_p1 = pnand %p1995_p0, %p2154_p5 }
 0x40a   : > { %p2001_p7 = por %p2000_p4, %p1999_p3 }
 0x40b   : > { %p1997_p2 = pneg %p1996_p1 }
 0x40c   : > { %p2003_p9 = por %p2002_p8, %p2001_p7 }
 0x40e   : > { %p2004_p10 = pnand %p2003_p9, %p1997_p2 }
 0x410   : > { %2007 = shalt.err (!%p2004_p10)
}
 0x411   : > { %1766 = dma.vmem_to_hbm [thread:$0]  (%p2154_p5), %s2531_s4, 2048, %s2527_s2, %s2536_s16, %s2050_s3, %s2050_s3, %s2051_s15  }
 0x412 PF: > { %p1780_p11 = scmp.ge.s32.totalorder %s2046_s20, 2  ;;  %s1438_s29 = sand.u32 1, %s2034_s17  }
 0x413   : > { %s1439_s1 = scalar_lea.sflag [#allocation3], %s1438_s29 }
 0x414   : > { %p1771_p12 = pnand %p1780_p11, %p2158_p6 }
 0x416   : > { %2025 = dma.done.wait (!%p1771_p12), %s1439_s1, 2048  }
 0x417   : > { %2027 = vsyncadd (!%p1771_p12), %s1439_s1, 4294965248  ;;  %s2637_s27 = sadd.s32 4294967294, %s2046_s20  }
 0x418   : > { %s1447_s30 = sand.u32 1, %s2637_s27  }
 0x419   : > { %s1448_s13 = scalar_lea.sflag [#allocation5], %s1447_s30 }
 0x41a   : > { %2029 = dma.done.wait (!%p1771_p12), %s1448_s13, 4096  }
 0x41b   : > { %2031 = vsyncadd (!%p1771_p12), %s1448_s13, 4294963200  ;;  %s2638_s4 = sld [smem:[#allocation9_spill]]  ;;  %p25_p5 = scmp.ge.s32.totalorder %s2139_s23, 4  }
 0x41c   : > { %s2639_s17 = smov %s2038_s18  ;;  %s2640_s18 = smov %s2042_s19 }
 0x41d   : > { %s2642_s20 = smov %s2139_s23  ;;  %27 = sbr.rel (!%p25_p5) target bundleno = 11 (0xb), region = 123 }
 0x421   : > { %s2641_s19 = smov %s2638_s4 }
 0x424   :  { %1462 = vsyncpa [#allocation3], 1 }
 0x425   :  { %1464 = vsyncpa [#allocation3 + $0x1], 1 }
 0x426   :  { %1465 = vsyncpa [#allocation5], 1 }
 0x427   :  { %1467 = vsyncpa [#allocation5 + $0x1], 1 }

</bundles_post_ra>
